<compile_context>
chip_gen: v6e
topology: v6e:2x2x1
jax: 0.10.0
libtpu: 0.0.40
codegen_flags: <defaults>
</compile_context>

<pallas_src>
import functools

import jax
import jax.numpy as jnp
from jax.experimental import pallas as pl
from jax.experimental.pallas import tpu as pltpu


# ---------------------------------------------------------------------------
# Fused kernel: conv3x3(valid) + bias + ReLU + maxpool2x2 + flatten + fc1 + fc2
# One grid step == one batch tile of TB samples.
# ---------------------------------------------------------------------------
def _cnn_student_kernel(x_ref, cw_ref, cb_ref, w1_ref, b1_ref, w2_ref, b2_ref,
                        out_ref, proto_ref):
    # x_ref    : (TB, H, W)            f32   input images (Cin == 1)
    # cw_ref   : (3, W, Wc*Cout)       bf16  banded conv weights, one per dy
    # cb_ref   : (1, Wc*Cout)          f32   conv bias tiled over output lanes
    # w1_ref   : (Hp*Wp*Cout, 512)     bf16  fc1 weight, pre-permuted + flat
    # b1_ref   : (1, 512)              f32
    # w2_ref   : (512, NCpad)          bf16  fc2 weight, transposed + lane pad
    # b2_ref   : (1, NCpad)            f32
    # out_ref  : (TB, NCpad)           f32
    # proto_ref: (TB, 512)             f32
    tb, h, w = x_ref.shape
    hc = h - 2                       # conv output rows per sample
    ccols = cw_ref.shape[2]          # Wc * Cout conv output lanes
    half = ccols // 2                # Wp * Cout pooled lanes
    hp = hc // 2                     # pooled rows per sample

    x = x_ref[...]                   # (TB, H, W) f32, resident in VMEM

    # Conv 3x3 (valid): 3 accumulated banded matmuls, batch folded into M.
    acc = jnp.zeros((tb * hc, ccols), jnp.float32)
    for dy in range(3):
        xs = x[:, dy:dy + hc, :].reshape(tb * hc, w).astype(jnp.bfloat16)
        acc = acc + jnp.dot(xs, cw_ref[dy],
                            preferred_element_type=jnp.float32)
    y = jnp.maximum(acc + cb_ref[...], 0.0)           # (TB*Hc, Wc*Cout), ReLU

    # MaxPool 2x2.  Width pairs are the two lane halves (ordering baked into
    # cw at init); height pairs become lane halves after folding adjacent
    # row pairs into lanes (all widths are multiples of 128).
    yw = jnp.maximum(y[:, :half], y[:, half:])        # (TB*Hc, Wp*Cout)
    z = yw.reshape(tb * hc // 2, 2 * half)            # rows (b, hp)
    pooled = jnp.maximum(z[:, :half], z[:, half:])    # (TB*Hp, Wp*Cout)

    # Flatten to (hp, wp, cout) feature order + fc1 as a single matmul; w1 was
    # pre-permuted so this equals torch's NCHW Flatten followed by x @ W1.T.
    feat = pooled.reshape(tb, hp * half).astype(jnp.bfloat16)   # (TB, 1024)
    proto = jnp.dot(feat, w1_ref[...],
                    preferred_element_type=jnp.float32) + b1_ref[...]
    proto_ref[...] = proto                             # proto (no activation)

    # fc2 on the resident proto (padded, lane-dense output).
    out_ref[...] = jnp.dot(proto.astype(jnp.bfloat16), w2_ref[...],
                           preferred_element_type=jnp.float32) + b2_ref[...]


# ---------------------------------------------------------------------------
# Forward wrapper (single pallas_call)
# ---------------------------------------------------------------------------
def cnn_student_forward(x_nchw, params, num_classes, block_batch=8):
    """x_nchw: (N, 1, H, W) f32.  Returns (out, proto) like the torch module."""
    n, cin, h, w = x_nchw.shape
    assert cin == 1, "kernel specializes the module default input_shape=1"
    cw, cb = params["conv_w"], params["conv_b"]
    w1, b1 = params["fc1_w"], params["fc1_b"]
    w2, b2 = params["fc2_w"], params["fc2_b"]
    hidden = w1.shape[1]
    ncpad = w2.shape[1]

    tb = block_batch
    npad = ((n + tb - 1) // tb) * tb
    x3 = x_nchw.reshape(n, h, w)                      # drop size-1 channel dim
    if npad != n:
        x3 = jnp.pad(x3, ((0, npad - n), (0, 0), (0, 0)))

    out_pad, proto_pad = pl.pallas_call(
        _cnn_student_kernel,
        out_shape=(jax.ShapeDtypeStruct((npad, ncpad), jnp.float32),
                   jax.ShapeDtypeStruct((npad, hidden), jnp.float32)),
        grid=(npad // tb,),
        in_specs=[
            pl.BlockSpec((tb, h, w), lambda i: (i, 0, 0)),
            pl.BlockSpec(cw.shape, lambda i: (0, 0, 0)),
            pl.BlockSpec(cb.shape, lambda i: (0, 0)),
            pl.BlockSpec(w1.shape, lambda i: (0, 0)),
            pl.BlockSpec(b1.shape, lambda i: (0, 0)),
            pl.BlockSpec(w2.shape, lambda i: (0, 0)),
            pl.BlockSpec(b2.shape, lambda i: (0, 0)),
        ],
        out_specs=(
            pl.BlockSpec((tb, ncpad), lambda i: (i, 0)),
            pl.BlockSpec((tb, hidden), lambda i: (i, 0)),
        ),
        compiler_params=pltpu.CompilerParams(
            dimension_semantics=("parallel",)),
    )(x3, cw, cb, w1, b1, w2, b2)

    out = out_pad[:n, :num_classes]
    proto = proto_pad[:n]
    return out, proto


# ---------------------------------------------------------------------------
# Parameter init (PyTorch-like) and one-time repack into kernel layouts
# ---------------------------------------------------------------------------
def init_raw_params(key, input_shape=1, mid_dim=256, num_classes=10):
    ks = jax.random.split(key, 6)

    def unif(kk, shape, fan_in):
        bound = 1.0 / jnp.sqrt(jnp.float32(fan_in))
        return jax.random.uniform(kk, shape, jnp.float32, -bound, bound)

    conv_fan = input_shape * 9
    fc1_in = mid_dim * 4
    return {
        "conv_w": unif(ks[0], (32, input_shape, 3, 3), conv_fan),
        "conv_b": unif(ks[1], (32,), conv_fan),
        "fc1_w": unif(ks[2], (512, fc1_in), fc1_in),
        "fc1_b": unif(ks[3], (512,), fc1_in),
        "fc2_w": unif(ks[4], (num_classes, 512), 512),
        "fc2_b": unif(ks[5], (num_classes,), 512),
    }


def prepare_params(raw, height, width):
    """One-time repack of the torch-layout weights into the kernel layouts."""
    hc, wc = height - 2, width - 2            # conv output spatial
    hp, wp = hc // 2, wc // 2                 # pooled spatial
    cout = raw["conv_w"].shape[0]
    hidden, fc1_in = raw["fc1_w"].shape
    num_classes = raw["fc2_w"].shape[0]
    assert raw["conv_w"].shape[1] == 1
    assert hc % 2 == 0 and wc % 2 == 0
    assert fc1_in == cout * hp * wp, (fc1_in, cout, hp, wp)

    # --- Conv -> banded matmul weights.  Output lane L = q*cout + co where the
    # conv output column is j(q) = 2*(q % wp) + (q // wp): even-j columns fill
    # the first wp*cout lanes, odd-j the second half, so the width half of the
    # 2x2 pool is a single split + max and pooled lanes land at wp_idx*cout+co.
    ck = raw["conv_w"][:, 0, :, :]                               # (cout, 3, 3)
    dxs = jnp.arange(3)[:, None, None]
    js = jnp.arange(wc)[None, :, None]
    ms = jnp.arange(width)[None, None, :]
    onehot = (ms == js + dxs).astype(jnp.float32)                # (3, wc, W)
    band = jnp.einsum("xjm,cyx->ymjc", onehot, ck)               # (3, W, wc, cout)
    jperm = jnp.array([2 * (q % wp) + (q // wp) for q in range(wc)])
    conv_w = band[:, :, jperm, :].reshape(3, width, wc * cout)
    conv_b = jnp.tile(raw["conv_b"], wc).reshape(1, wc * cout)   # b[L % cout]

    # --- fc1: permute rows to the kernel's flattened feature order
    # (hp, wp, cout) so the in-kernel contraction matches torch's NCHW flatten.
    w1 = raw["fc1_w"].reshape(hidden, cout, hp, wp)
    w1 = jnp.transpose(w1, (2, 3, 1, 0)).reshape(hp * wp * cout, hidden)
    b1 = raw["fc1_b"].reshape(1, hidden)

    # --- fc2: transpose + pad the class dim to a lane-dense multiple of 128.
    ncpad = max(128, ((num_classes + 127) // 128) * 128)
    w2 = jnp.zeros((hidden, ncpad), jnp.float32).at[:, :num_classes].set(
        raw["fc2_w"].T)
    b2 = jnp.zeros((1, ncpad), jnp.float32).at[:, :num_classes].set(
        raw["fc2_b"])

    return {
        "conv_w": conv_w.astype(jnp.bfloat16),
        "conv_b": conv_b,
        "fc1_w": w1.astype(jnp.bfloat16),
        "fc1_b": b1,
        "fc2_w": w2.astype(jnp.bfloat16),
        "fc2_b": b2,
    }


# ---------------------------------------------------------------------------
# Pure-JAX reference of the torch module (for a numerical cross-check)
# ---------------------------------------------------------------------------
def reference_forward(x_nchw, raw):
    y = jax.lax.conv_general_dilated(
        x_nchw, raw["conv_w"], window_strides=(1, 1), padding="VALID",
        dimension_numbers=("NCHW", "OIHW", "NCHW"))
    y = jnp.maximum(y + raw["conv_b"][None, :, None, None], 0.0)
    n, c, hc, wc = y.shape
    p = y.reshape(n, c, hc // 2, 2, wc // 2, 2).max(axis=(3, 5))
    feat = p.reshape(n, -1)
    proto = feat @ raw["fc1_w"].T + raw["fc1_b"]
    out = proto @ raw["fc2_w"].T + raw["fc2_b"]
    return out, proto


if __name__ == "__main__":
    key = jax.random.PRNGKey(0)
    kp, kx = jax.random.split(key)

    # CNN_student defaults: input_shape=1, mid_dim=256, num_classes=10.
    # Linear(mid_dim*4 = 1024, 512) after Conv3x3(valid) + MaxPool2x2 + Flatten
    # requires 32 * ((H-2)//2) * ((W-2)//2) == 1024; H=10, W=18 satisfies it.
    H, W = 10, 18
    num_classes = 10
    batch = 16          # 2 grid steps of 8 samples -> both v7x cores busy

    raw = init_raw_params(kp, input_shape=1, mid_dim=256,
                          num_classes=num_classes)
    params = prepare_params(raw, H, W)

    x = jax.random.normal(kx, (batch, 1, H, W), jnp.float32)

    fwd = jax.jit(functools.partial(cnn_student_forward, params=params,
                                    num_classes=num_classes))
    out, proto = fwd(x)
    jax.block_until_ready((out, proto))

    assert out.shape == (batch, num_classes) and out.dtype == jnp.float32
    assert proto.shape == (batch, 512) and proto.dtype == jnp.float32

    # Numerical cross-check (generous tolerance: bf16 MXU inputs, f32 accum).
    out_ref, proto_ref = reference_forward(x, raw)
    assert float(jnp.max(jnp.abs(proto - proto_ref))) < 5e-2
    assert float(jnp.max(jnp.abs(out - out_ref))) < 5e-2

    print("KERNEL_OK")
</pallas_src>

<mosaic_0001>
module attributes {stable_mosaic.version = 11 : i64} {
  func.func @_cnn_student_kernel(%arg0: i32, %arg1: memref<8x10x18xf32, #tpu.memory_space<vmem>>, %arg2: memref<3x18x512xbf16, #tpu.memory_space<vmem>>, %arg3: memref<1x512xf32, #tpu.memory_space<vmem>>, %arg4: memref<1024x512xbf16, #tpu.memory_space<vmem>>, %arg5: memref<1x512xf32, #tpu.memory_space<vmem>>, %arg6: memref<512x128xbf16, #tpu.memory_space<vmem>>, %arg7: memref<1x128xf32, #tpu.memory_space<vmem>>, %arg8: memref<8x128xf32, #tpu.memory_space<vmem>>, %arg9: memref<8x512xf32, #tpu.memory_space<vmem>>) attributes {dimension_semantics = [#tpu.dimension_semantics<parallel>], iteration_bounds = array<i64: 2>, scalar_prefetch = 0 : i64, scratch_operands = 0 : i64, tpu.core_type = #tpu.core_type<tc>, window_params = [{transform_indices = @transform_0, window_bounds = array<i64: 8, 10, 18>}, {pipeline_mode = #tpu.pipeline_mode<synchronous>, transform_indices = @transform_1, window_bounds = array<i64: 3, 18, 512>}, {pipeline_mode = #tpu.pipeline_mode<synchronous>, transform_indices = @transform_2, window_bounds = array<i64: 1, 512>}, {pipeline_mode = #tpu.pipeline_mode<synchronous>, transform_indices = @transform_3, window_bounds = array<i64: 1024, 512>}, {pipeline_mode = #tpu.pipeline_mode<synchronous>, transform_indices = @transform_4, window_bounds = array<i64: 1, 512>}, {pipeline_mode = #tpu.pipeline_mode<synchronous>, transform_indices = @transform_5, window_bounds = array<i64: 512, 128>}, {pipeline_mode = #tpu.pipeline_mode<synchronous>, transform_indices = @transform_6, window_bounds = array<i64: 1, 128>}, {transform_indices = @transform_7, window_bounds = array<i64: 8, 128>}, {transform_indices = @transform_8, window_bounds = array<i64: 8, 512>}]} {
    %c0 = arith.constant 0 : index
    %c0_0 = arith.constant 0 : index
    %c0_1 = arith.constant 0 : index
    %0 = vector.load %arg1[%c0, %c0_0, %c0_1] : memref<8x10x18xf32, #tpu.memory_space<vmem>>, vector<8x10x18xf32>
    %cst = arith.constant 0.000000e+00 : f32
    %1 = vector.broadcast %cst : f32 to vector<64x512xf32>
    %2 = vector.extract_strided_slice %0 {offsets = [0, 0, 0], sizes = [8, 8, 18], strides = [1, 1, 1]} : vector<8x10x18xf32> to vector<8x8x18xf32>
    %3 = vector.shape_cast %2 : vector<8x8x18xf32> to vector<64x18xf32>
    %4 = arith.truncf %3 : vector<64x18xf32> to vector<64x18xbf16>
    %c0_2 = arith.constant 0 : index
    %c0_3 = arith.constant 0 : index
    %c0_4 = arith.constant 0 : index
    %5 = vector.load %arg2[%c0_2, %c0_3, %c0_4] : memref<3x18x512xbf16, #tpu.memory_space<vmem>>, vector<1x18x512xbf16>
    %6 = vector.shape_cast %5 : vector<1x18x512xbf16> to vector<18x512xbf16>
    %cst_5 = arith.constant dense<0.000000e+00> : vector<64x512xf32>
    %7 = tpu.matmul %4, %6, %cst_5 {dimension_numbers = #tpu.dot_dimension_numbers<[1], [0], [0], [1], [0, 0, 1, 1], [], []>} : vector<64x18xbf16>, vector<18x512xbf16>, vector<64x512xf32> -> vector<64x512xf32>
    %8 = arith.addf %1, %7 : vector<64x512xf32>
    %9 = vector.extract_strided_slice %0 {offsets = [0, 1, 0], sizes = [8, 8, 18], strides = [1, 1, 1]} : vector<8x10x18xf32> to vector<8x8x18xf32>
    %10 = vector.shape_cast %9 : vector<8x8x18xf32> to vector<64x18xf32>
    %11 = arith.truncf %10 : vector<64x18xf32> to vector<64x18xbf16>
    %c1 = arith.constant 1 : index
    %c0_6 = arith.constant 0 : index
    %c0_7 = arith.constant 0 : index
    %12 = vector.load %arg2[%c1, %c0_6, %c0_7] : memref<3x18x512xbf16, #tpu.memory_space<vmem>>, vector<1x18x512xbf16>
    %13 = vector.shape_cast %12 : vector<1x18x512xbf16> to vector<18x512xbf16>
    %cst_8 = arith.constant dense<0.000000e+00> : vector<64x512xf32>
    %14 = tpu.matmul %11, %13, %cst_8 {dimension_numbers = #tpu.dot_dimension_numbers<[1], [0], [0], [1], [0, 0, 1, 1], [], []>} : vector<64x18xbf16>, vector<18x512xbf16>, vector<64x512xf32> -> vector<64x512xf32>
    %15 = arith.addf %8, %14 : vector<64x512xf32>
    %16 = vector.extract_strided_slice %0 {offsets = [0, 2, 0], sizes = [8, 8, 18], strides = [1, 1, 1]} : vector<8x10x18xf32> to vector<8x8x18xf32>
    %17 = vector.shape_cast %16 : vector<8x8x18xf32> to vector<64x18xf32>
    %18 = arith.truncf %17 : vector<64x18xf32> to vector<64x18xbf16>
    %c2 = arith.constant 2 : index
    %c0_9 = arith.constant 0 : index
    %c0_10 = arith.constant 0 : index
    %19 = vector.load %arg2[%c2, %c0_9, %c0_10] : memref<3x18x512xbf16, #tpu.memory_space<vmem>>, vector<1x18x512xbf16>
    %20 = vector.shape_cast %19 : vector<1x18x512xbf16> to vector<18x512xbf16>
    %cst_11 = arith.constant dense<0.000000e+00> : vector<64x512xf32>
    %21 = tpu.matmul %18, %20, %cst_11 {dimension_numbers = #tpu.dot_dimension_numbers<[1], [0], [0], [1], [0, 0, 1, 1], [], []>} : vector<64x18xbf16>, vector<18x512xbf16>, vector<64x512xf32> -> vector<64x512xf32>
    %22 = arith.addf %15, %21 : vector<64x512xf32>
    %c0_12 = arith.constant 0 : index
    %c0_13 = arith.constant 0 : index
    %23 = vector.load %arg3[%c0_12, %c0_13] : memref<1x512xf32, #tpu.memory_space<vmem>>, vector<1x512xf32>
    %24 = vector.broadcast %23 : vector<1x512xf32> to vector<64x512xf32>
    %25 = arith.addf %22, %24 : vector<64x512xf32>
    %cst_14 = arith.constant 0.000000e+00 : f32
    %26 = vector.broadcast %cst_14 : f32 to vector<64x512xf32>
    %27 = arith.maximumf %25, %26 : vector<64x512xf32>
    %28 = vector.extract_strided_slice %27 {offsets = [0, 0], sizes = [64, 256], strides = [1, 1]} : vector<64x512xf32> to vector<64x256xf32>
    %29 = vector.extract_strided_slice %27 {offsets = [0, 256], sizes = [64, 256], strides = [1, 1]} : vector<64x512xf32> to vector<64x256xf32>
    %30 = arith.maximumf %28, %29 : vector<64x256xf32>
    %31 = vector.shape_cast %30 : vector<64x256xf32> to vector<32x512xf32>
    %32 = vector.extract_strided_slice %31 {offsets = [0, 0], sizes = [32, 256], strides = [1, 1]} : vector<32x512xf32> to vector<32x256xf32>
    %33 = vector.extract_strided_slice %31 {offsets = [0, 256], sizes = [32, 256], strides = [1, 1]} : vector<32x512xf32> to vector<32x256xf32>
    %34 = arith.maximumf %32, %33 : vector<32x256xf32>
    %35 = vector.shape_cast %34 : vector<32x256xf32> to vector<8x1024xf32>
    %36 = arith.truncf %35 : vector<8x1024xf32> to vector<8x1024xbf16>
    %c0_15 = arith.constant 0 : index
    %c0_16 = arith.constant 0 : index
    %37 = vector.load %arg4[%c0_15, %c0_16] : memref<1024x512xbf16, #tpu.memory_space<vmem>>, vector<1024x512xbf16>
    %cst_17 = arith.constant dense<0.000000e+00> : vector<8x512xf32>
    %38 = tpu.matmul %36, %37, %cst_17 {dimension_numbers = #tpu.dot_dimension_numbers<[1], [0], [0], [1], [0, 0, 1, 1], [], []>} : vector<8x1024xbf16>, vector<1024x512xbf16>, vector<8x512xf32> -> vector<8x512xf32>
    %c0_18 = arith.constant 0 : index
    %c0_19 = arith.constant 0 : index
    %39 = vector.load %arg5[%c0_18, %c0_19] : memref<1x512xf32, #tpu.memory_space<vmem>>, vector<1x512xf32>
    %40 = vector.broadcast %39 : vector<1x512xf32> to vector<8x512xf32>
    %41 = arith.addf %38, %40 : vector<8x512xf32>
    %c0_20 = arith.constant 0 : index
    %c0_21 = arith.constant 0 : index
    %42 = vector.load %arg9[%c0_20, %c0_21] : memref<8x512xf32, #tpu.memory_space<vmem>>, vector<8x512xf32>
    tpu.vector_store %arg9[%c0_20, %c0_21], %41 {strides = array<i32>} : memref<8x512xf32, #tpu.memory_space<vmem>>, vector<8x512xf32>,
    %43 = arith.truncf %41 : vector<8x512xf32> to vector<8x512xbf16>
    %c0_22 = arith.constant 0 : index
    %c0_23 = arith.constant 0 : index
    %44 = vector.load %arg6[%c0_22, %c0_23] : memref<512x128xbf16, #tpu.memory_space<vmem>>, vector<512x128xbf16>
    %cst_24 = arith.constant dense<0.000000e+00> : vector<8x128xf32>
    %45 = tpu.matmul %43, %44, %cst_24 {dimension_numbers = #tpu.dot_dimension_numbers<[1], [0], [0], [1], [0, 0, 1, 1], [], []>} : vector<8x512xbf16>, vector<512x128xbf16>, vector<8x128xf32> -> vector<8x128xf32>
    %c0_25 = arith.constant 0 : index
    %c0_26 = arith.constant 0 : index
    %46 = vector.load %arg7[%c0_25, %c0_26] : memref<1x128xf32, #tpu.memory_space<vmem>>, vector<1x128xf32>
    %47 = vector.broadcast %46 : vector<1x128xf32> to vector<8x128xf32>
    %48 = arith.addf %45, %47 : vector<8x128xf32>
    %c0_27 = arith.constant 0 : index
    %c0_28 = arith.constant 0 : index
    %49 = vector.load %arg8[%c0_27, %c0_28] : memref<8x128xf32, #tpu.memory_space<vmem>>, vector<8x128xf32>
    tpu.vector_store %arg8[%c0_27, %c0_28], %48 {strides = array<i32>} : memref<8x128xf32, #tpu.memory_space<vmem>>, vector<8x128xf32>,
    return
  }
  func.func @transform_0(%arg0: i32) -> (i32, i32, i32) {
    %c0_i32 = arith.constant 0 : i32
    %c0_i32_0 = arith.constant 0 : i32
    %c0_i32_1 = arith.constant 0 : i32
    return %arg0, %c0_i32, %c0_i32_0 : i32, i32, i32
  }
  func.func @transform_1(%arg0: i32) -> (i32, i32, i32) {
    %c0_i32 = arith.constant 0 : i32
    %c0_i32_0 = arith.constant 0 : i32
    %c0_i32_1 = arith.constant 0 : i32
    %c0_i32_2 = arith.constant 0 : i32
    return %c0_i32, %c0_i32_0, %c0_i32_1 : i32, i32, i32
  }
  func.func @transform_2(%arg0: i32) -> (i32, i32) {
    %c0_i32 = arith.constant 0 : i32
    %c0_i32_0 = arith.constant 0 : i32
    %c0_i32_1 = arith.constant 0 : i32
    return %c0_i32, %c0_i32_0 : i32, i32
  }
  func.func @transform_3(%arg0: i32) -> (i32, i32) {
    %c0_i32 = arith.constant 0 : i32
    %c0_i32_0 = arith.constant 0 : i32
    %c0_i32_1 = arith.constant 0 : i32
    return %c0_i32, %c0_i32_0 : i32, i32
  }
  func.func @transform_4(%arg0: i32) -> (i32, i32) {
    %c0_i32 = arith.constant 0 : i32
    %c0_i32_0 = arith.constant 0 : i32
    %c0_i32_1 = arith.constant 0 : i32
    return %c0_i32, %c0_i32_0 : i32, i32
  }
  func.func @transform_5(%arg0: i32) -> (i32, i32) {
    %c0_i32 = arith.constant 0 : i32
    %c0_i32_0 = arith.constant 0 : i32
    %c0_i32_1 = arith.constant 0 : i32
    return %c0_i32, %c0_i32_0 : i32, i32
  }
  func.func @transform_6(%arg0: i32) -> (i32, i32) {
    %c0_i32 = arith.constant 0 : i32
    %c0_i32_0 = arith.constant 0 : i32
    %c0_i32_1 = arith.constant 0 : i32
    return %c0_i32, %c0_i32_0 : i32, i32
  }
  func.func @transform_7(%arg0: i32) -> (i32, i32) {
    %c0_i32 = arith.constant 0 : i32
    %c0_i32_0 = arith.constant 0 : i32
    return %arg0, %c0_i32 : i32, i32
  }
  func.func @transform_8(%arg0: i32) -> (i32, i32) {
    %c0_i32 = arith.constant 0 : i32
    %c0_i32_0 = arith.constant 0 : i32
    return %arg0, %c0_i32 : i32, i32
  }
}

</mosaic_0001>

<bundles_post_ra>
// kernel: cnn_student_forward.1
= control target key start
LH: loop header
LB: loop body
LE: loop exit
PB: predicated region body
PF: predicated region fallthrough
CT: control target
= control target key end

     0   :  { %s5997_s0 = inlined_call_operand.vmem [shape: f32[16,10,18], index: 0, kind: input, shape index: {}]   ;;  %s5998_s1 = inlined_call_operand.vmem [shape: bf16[3,18,512], index: 1, kind: input, shape index: {}]   ;;  %s5999_s2 = inlined_call_operand.vmem [shape: f32[1,512], index: 2, kind: input, shape index: {}]   ;;  %s6000_s3 = inlined_call_operand.hbm [shape: bf16[1024,512], index: 3, kind: input, shape index: {}]   ;;  %s6001_s4 = inlined_call_operand.vmem [shape: f32[1,512], index: 4, kind: input, shape index: {}]   ;;  %s6002_s5 = inlined_call_operand.vmem [shape: bf16[512,128], index: 5, kind: input, shape index: {}]   ;;  %s6003_s6 = inlined_call_operand.vmem [shape: f32[1,128], index: 6, kind: input, shape index: {}]   ;;  %s6004_s7 = inlined_call_operand.hbm [shape: f32[16,128], index: 7, kind: output, shape index: {0}]   ;;  %s6005_s8 = inlined_call_operand.hbm [shape: f32[16,512], index: 8, kind: output, shape index: {1}]  }
   0x1   :  { %6011 = sst [smem:[#allocation27_spill]] %s5997_s0 }
   0x2   :  { %14 = vsyncpa [#allocation3], 0 }
   0x3   :  { %15 = vsyncpa [#allocation4], 0 }
   0x4   :  { %17 = vsyncpa [#allocation4 + $0x1], 0 }
   0x5   :  { %18 = vsyncpa [#allocation7], 0 }
   0x6   :  { %20 = vsyncpa [#allocation7 + $0x1], 0  ;;  %s5206_s27 = smov 0   ;;  %s5208_s28 = smov 0  }
   0x7   :  { %s5210_s29 = smov 0   ;;  %s5212_s30 = smov 0  }
   0x8 LB: > { %s5227_s9 = sadd.s32 4294967295, %s5150_s30   ;;  %s4104_s10 = sadd.s32 4294967294, %s5150_s30   ;;  %s5150_s30 = sphi %s5212_s30, %s6058_s30   ;;  %s5146_s29 = sphi %s5210_s29, %s6057_s29   ;;  %s5142_s28 = sphi %s5208_s28, %s6056_s28   ;;  %s5138_s27 = sphi %s5206_s27, %s6055_s27  }
   0x9   : > { %s5231_s11 = sadd.s32 1, %s5150_s30   ;;  %s185_s12 = sadd.s32 1, %s5146_s29 }
   0xa   : > { %s182_s13 = ssub.s32 %s5150_s30, %s5231_s11  ;;  %p195_p0 = scmp.ne.s32.totalorder %s5146_s29, %s5142_s28 }
   0xb   : > { %p183_p1 = scmp.eq.s32.totalorder %s182_s13, 0  ;;  %p196_p2 = scmp.eq.s32.totalorder %s5227_s9, 1 }
   0xc   : > { %p201_p3 = scmp.ne.s32.totalorder %s5142_s28, %s5138_s27  ;;  %p202_p4 = scmp.eq.s32.totalorder %s4104_s10, 1 }
   0xd   : > { %s5242_s14 = scalar_select %p183_p1, %s5146_s29, %s185_s12  }
   0xe   : > { %p5244_p5 = por %p196_p2, %p195_p0  ;;  %p5248_p6 = por %p202_p4, %p201_p3 }
   0xf   : > { %p4105_p7 = scmp.ge.s32.totalorder %s5150_s30, 1  ;;  %p235_p8 = scmp.lt.s32.totalorder %s5150_s30, 3 }
  0x10   : > { %s6013_s16 = scalar_select %p5248_p6, 1, 0 }
  0x11   : > { %p4542_p9 = scmp.eq.s32.totalorder %s5227_s9, 0  ;;  %p5255_p10 = pnand %p4105_p7, %p235_p8 }
  0x12   : > { %s5152_s18 = smov [#allocation2]  }
  0x13   : > { %s253_s19 = sshll.u32 %s5152_s18, 4  ;;  %p4531_p11 = pneg %p5255_p10  ;;  %s254_s19 = int_to_ptr.vmem [resolvable:$true] %s253_s19 }
  0x14   : > { %s5041_s20 = scalar_lea.vmem %s254_s19, 32768  ;;  %p5049_p3 = scmp.lt.s32.totalorder %s254_s19, %s254_s19 }
  0x15   : > { %p4532_p12 = pnand %p4542_p9, %p4531_p11  ;;  %p5042_p0 = scmp.ne.s32.totalorder %s254_s19, %s5041_s20 }
  0x16   : > { %p5050_p4 = scmp.lt.s32.totalorder %s5041_s20, %s5041_s20 }
  0x17   : > { %p5032_p13 = pneg %p4532_p12 }
  0x18   : > { %p5051_p6 = por %p5050_p4, %p5049_p3 }
  0x19   : > { %p5044_p1 = pnand %p5042_p0, %p5032_p13 }
  0x1b   : > { %p5045_p2 = pneg %p5044_p1 }
  0x1d   : > { %p5052_p7 = pnand %p5051_p6, %p5045_p2 }
  0x1f   : > { %5055 = shalt.err (!%p5052_p7)
}
  0x20   : > { %s5153_s21 = smov 256   ;;  %s5154_s22 = smov 16  }
  0x21   : > { %4534 = dma.hbm_to_vmem [thread:$0]  (!%p4532_p12), %s6000_s3, 32768, %s254_s19, [#allocation3], %s5153_s21, %s5153_s21, %s5154_s22  }
  0x22   : > { %288 = sbr.rel (%p5255_p10) target bundleno = 994 (0x3e2), region = 48 }
  0x27   : > { %5125 = dma.done.wait (%p4542_p9), [#allocation3], 32768  }
  0x28   : > { %5127 = vsyncadd (%p4542_p9), [#allocation3], 4294934528  ;;  %s4112_s25 = sshll.u32 %s5227_s9, 3  ;;  %v5155_v0 = vmov 0   ;;  %vm465_vm0 = vcmask 1040384   ;;  %s6015_s0 = sld [smem:[#allocation27_spill]] }
  0x29   : > { %510 = vmatprep.mubr.bf16.mxu0 %v5155_v0  ;;  %583 = vmatprep.mubr.bf16.mxu1 %v5155_v0  ;;  %p329_p6 = scmp.lt.s32.totalorder %s4112_s25, 15  ;;  %v4119_v1 = vld [vmem:[%s5998_s1 + $0x50] sm:$0x11]  ;;  %v4120_v2 = vld [vmem:[%s5998_s1 + $0x58] sm:$0x11]  ;;  %vm378_vm1 = vcmask 1046528  }
  0x2a   : > { %v4126_v3 = vcombine.high %v4119_v1, %v4119_v1  ;;  %v4128_v4 = vcombine.high %v4120_v2, %v4120_v2  ;;  %v4125_v5 = vcombine.low %v4119_v1, %v4119_v1  ;;  %v4127_v6 = vcombine.low %v4120_v2, %v4120_v2  ;;  %v4588_v7 = vld [vmem:[%s5998_s1 + $0x34] ss:$16 sps:$4 sm:$0xff]   ;;  %v4590_v8 = vld [vmem:[%s5998_s1 + $0x3c] ss:$16 sps:$4 sm:$0xff]   ;;  %v4592_v9 = vld [vmem:[%s5998_s1 + $0x30] ss:$16 sps:$4 sm:$0xff]  }
  0x2b   : > { %s6060_s25 = smov (!%p329_p6, %s4112_s25), 15  ;;  %vm452_vm2 = vcmask 146432   ;;  %v4593_v12 = vld [vmem:[%s5998_s1 + $0x38] ss:$16 sps:$4 sm:$0xff]   ;;  %v360_v23 = vld [vmem:[%s5998_s1 + $0x20] sm:$0x11] }
  0x2c   : > { %s4477_s26 = sshll.u32 %s6060_s25, 4  ;;  %4129 = vmatprep.subr.msk.bf16.mxu0 %vm465_vm0, %v4126_v3  ;;  %4134 = vmatprep.subr.msk.bf16.mxu1 %vm465_vm0, %v4128_v4  ;;  %v467_v10 = vsel %vm465_vm0, %v4125_v5, 0  ;;  %v473_v11 = vsel %vm465_vm0, %v4127_v6, 0  ;;  %v4144_v26 = vcombine.high %v360_v23, %v360_v23  ;;  %v361_v27 = vld [vmem:[%s5998_s1 + $0x28] sm:$0x11]  ;;  %v4143_v28 = vcombine.low %v360_v23, %v360_v23  ;;  %s5908_s23 = sand.u32 1, %s5142_s28  }
  0x2d   : > { %491 = vmatpush1.bf16.msra.mxu0 %v467_v10  ;;  %564 = vmatpush1.bf16.msra.mxu1 %v473_v11  ;;  %v4146_v33 = vcombine.high %v361_v27, %v361_v27  ;;  %v4145_v34 = vcombine.low %v361_v27, %v361_v27  ;;  %vm824_vm3 = vcmask 1045504   ;;  %v4598_v48 = vld [vmem:[%s5998_s1] ss:$16 sps:$4 sm:$0xff]   ;;  %v4600_v49 = vld [vmem:[%s5998_s1 + $0x4] ss:$16 sps:$4 sm:$0xff]   ;;  %s4111_s24 = sshll.u32 %s5908_s23, 5 }
  0x2e   : > { %s5284_s20 = scalar_lea.vmem %s6015_s0, %s4477_s26  ;;  %492 = vmatprep.subr.bf16.mxu0 %v4588_v7  ;;  %565 = vmatprep.subr.bf16.mxu1 %v4590_v8  ;;  %v667_v38 = vsel %vm465_vm0, %v4143_v28, 0  ;;  %v4601_v53 = vld [vmem:[%s5998_s1 + $0x8] ss:$16 sps:$4 sm:$0xff]   ;;  %v4603_v54 = vld [vmem:[%s5998_s1 + $0xc] ss:$16 sps:$4 sm:$0xff]   ;;  %s5913_s25 = scalar_lea.vmem [#allocation6], %s4111_s24 }
  0x2f   : > { %v5303_v13 = vld [vmem:[%s5284_s20] sm:$0xff]  ;;  %v5306_v14 = vld [vmem:[%s5284_s20 + $0x10] sm:$0xff]  ;;  %v337_v15 = vld [vmem:[%s5284_s20 + $0x8] sm:$0x3]  ;;  %v673_v43 = vsel %vm465_vm0, %v4145_v34, 0  ;;  %s4478_s21 = sshll.u32 %s5227_s9, 9 }
  0x30   : > { %v339_v16 = vld [vmem:[%s5284_s20 + $0x18] sm:$0x3]  ;;  %v379_v17 = vrot.slane %v5303_v13, 1  ;;  %v382_v18 = vrot.slane %v5306_v14, 1  ;;  %v380_v19 = vrot.slane %v337_v15, 1  ;;  %v825_v21 = vrot.slane %v5303_v13, 2  ;;  %s3999_s26 = scalar_lea.hbm %s6005_s8, %s4478_s21 }
  0x31   : > { %v383_v20 = vrot.slane %v339_v16, 1  ;;  %v826_v22 = vrot.slane %v337_v15, 2  ;;  %v828_v24 = vrot.slane %v5306_v14, 2  ;;  %v829_v25 = vrot.slane %v339_v16, 2  ;;  %v5321_v29 = vld [vmem:[%s5284_s20 + $0x20] sm:$0xff]  ;;  %v5324_v30 = vld [vmem:[%s5284_s20 + $0x30] sm:$0xff]  ;;  %493 = vmatpush1.bf16.msra.mxu0 %v4592_v9  ;;  %566 = vmatpush1.bf16.msra.mxu1 %v4593_v12 }
  0x32   : > { %v381_v31 = vsel %vm378_vm1, %v379_v17, %v380_v19  ;;  %v341_v35 = vld [vmem:[%s5284_s20 + $0x28] sm:$0x3]  ;;  %v5330_v36 = vld [vmem:[%s5284_s20 + $0x38] sm:$0x3]  ;;  %v385_v39 = vrot.slane %v5321_v29, 1  ;;  %v5335_v41 = vld [vmem:[%s5284_s20 + $0x40] sm:$0xff]  ;;  %4147 = vmatprep.subr.msk.bf16.mxu0 %vm465_vm0, %v4144_v26  ;;  %4152 = vmatprep.subr.msk.bf16.mxu1 %vm465_vm0, %v4146_v33 }
  0x33   : > { %v384_v32 = vsel %vm378_vm1, %v382_v18, %v383_v20  ;;  %v386_v40 = vrot.slane %v341_v35, 1  ;;  %v5338_v42 = vld [vmem:[%s5284_s20 + $0x48] sm:$0x3]  ;;  %v388_v44 = vrot.slane %v5324_v30, 1  ;;  %v389_v45 = vrot.slane %v5330_v36, 1  ;;  %v5346_v46 = vld [vmem:[%s5284_s20 + $0x50] sm:$0xff] }
  0x34   : > { %v411_v37 = vpack.c.bf16 %v384_v32, %v381_v31  ;;  %v347_v47 = vld [vmem:[%s5284_s20 + $0x58] sm:$0x3]  ;;  %v831_v50 = vrot.slane %v5321_v29, 2  ;;  %v832_v55 = vrot.slane %v341_v35, 2  ;;  %v391_v56 = vrot.slane %v5335_v41, 1  ;;  %v5385_v8 = vld [vmem:[%s5284_s20 + $0x60] sm:$0xff] }
  0x35   : > { %v387_v51 = vsel %vm378_vm1, %v385_v39, %v386_v40  ;;  %v390_v52 = vsel %vm378_vm1, %v388_v44, %v389_v45  ;;  %v392_v57 = vrot.slane %v5338_v42, 1  ;;  %v827_v58 = vsel %vm824_vm3, %v825_v21, %v826_v22  ;;  %v4161_v62 = vld [vmem:[%s5998_s1 + $0x80] sm:$0x11]  ;;  %v4162_v2 = vld [vmem:[%s5998_s1 + $0x88] sm:$0x11]  ;;  %v5389_v10 = vld [vmem:[%s5284_s20 + $0x70] sm:$0xff] }
  0x36   : > { %4130 = vmatmul.mubr.msk.bf16.vlgmr.msra.gmra.mxu0 %vm452_vm2, %v411_v37  ;;  %4135 = vmatmul.mubr.msk.bf16.vlgmr.msra.gmra.mxu1 %vm452_vm2, %v411_v37  ;;  %v830_v59 = vsel %vm824_vm3, %v828_v24, %v829_v25  ;;  %v394_v60 = vrot.slane %v5346_v46, 1  ;;  %v395_v61 = vrot.slane %v347_v47, 1  ;;  %v412_v63 = vpack.c.bf16 %v390_v52, %v387_v51  ;;  %v349_v9 = vld [vmem:[%s5284_s20 + $0x68] sm:$0x3]  ;;  %v351_v12 = vld [vmem:[%s5284_s20 + $0x78] sm:$0x3] }
  0x37   : > { %691 = vmatpush1.bf16.msra.mxu0 %v667_v38  ;;  %764 = vmatpush1.bf16.msra.mxu1 %v673_v43  ;;  %v4168_v1 = vcombine.high %v4161_v62, %v4161_v62  ;;  %v5379_v3 = vpack.c.bf16 %v830_v59, %v827_v58  ;;  %v833_v4 = vsel %vm824_vm3, %v831_v50, %v832_v55  ;;  %v834_v6 = vrot.slane %v5324_v30, 2  ;;  %v4608_v51 = vld [vmem:[%s5998_s1 + $0x60] ss:$16 sps:$4 sm:$0xff]   ;;  %v4625_v55 = vld [vmem:[#allocation2 + $0x2c4] ss:$16 sps:$4 sm:$0xff]   ;;  %s4001_s10 = sshll.u32 %s5913_s25, 4  ;;  %s4002_s10 = int_to_ptr.vmem [resolvable:$true] %s4001_s10 }
  0x38   : > { %520 = vmatprep.mubr.bf16.mxu0 %v5155_v0  ;;  %593 = vmatprep.mubr.bf16.mxu1 %v5155_v0  ;;  %v4170_v5 = vcombine.high %v4162_v2, %v4162_v2  ;;  %v393_v7 = vsel %vm378_vm1, %v391_v56, %v392_v57  ;;  %v835_v11 = vrot.slane %v5330_v36, 2  ;;  %v837_v15 = vrot.slane %v5335_v41, 2  ;;  %v4620_v56 = vld [vmem:[#allocation2 + $0xc0] ss:$16 sps:$4 sm:$0xff]   ;;  %v4631_v58 = vld [vmem:[#allocation2 + $0x2a4] ss:$16 sps:$4 sm:$0xff]  }
  0x39   : > { %692 = vmatprep.subr.bf16.mxu0 %v4600_v49  ;;  %765 = vmatprep.subr.bf16.mxu1 %v4603_v54  ;;  %v838_v16 = vrot.slane %v5338_v42, 2  ;;  %v840_v17 = vrot.slane %v5346_v46, 2  ;;  %v841_v18 = vrot.slane %v347_v47, 2  ;;  %v396_v19 = vsel %vm378_vm1, %v394_v60, %v395_v61  ;;  %v4610_v47 = vld [vmem:[%s5998_s1 + $0x64] ss:$16 sps:$4 sm:$0xff]   ;;  %s3974_s12 = scalar_lea.sflag [#allocation7], %s5908_s23 }
  0x3a   : > { %v836_v20 = vsel %vm824_vm3, %v834_v6, %v835_v11  ;;  %v843_v21 = vrot.slane %v5385_v8, 2  ;;  %v844_v22 = vrot.slane %v349_v9, 2  ;;  %v846_v26 = vrot.slane %v5389_v10, 2  ;;  %v4622_v54 = vld [vmem:[#allocation2 + $0xc4] ss:$16 sps:$4 sm:$0xff]   ;;  %s5056_s13 = scalar_lea.vmem %s4002_s10, 512 }
  0x3b   : > { %693 = vmatpush1.bf16.msra.mxu0 %v4598_v48  ;;  %766 = vmatpush1.bf16.msra.mxu1 %v4601_v53  ;;  %v5405_v23 = vpack.c.bf16 %v836_v20, %v833_v4  ;;  %v839_v24 = vsel %vm824_vm3, %v837_v15, %v838_v16  ;;  %v842_v25 = vsel %vm824_vm3, %v840_v17, %v841_v18  ;;  %v847_v31 = vrot.slane %v351_v12, 2  ;;  %v4613_v48 = vld [vmem:[%s5998_s1 + $0x6c] ss:$16 sps:$4 sm:$0xff]   ;;  %v4617_v53 = vld [vmem:[#allocation2 + $0x2e0] ss:$16 sps:$4 sm:$0xff]   ;;  %p5057_p8 = scmp.ne.s32.totalorder %s4002_s10, %s5056_s13  ;;  %s5159_s17 = smov [#allocation6]  }
  0x3c   : > { %4171 = vmatprep.subr.msk.bf16.mxu0 %vm465_vm0, %v4168_v1  ;;  %4176 = vmatprep.subr.msk.bf16.mxu1 %vm465_vm0, %v4170_v5  ;;  %v5410_v27 = vpack.c.bf16 %v842_v25, %v839_v24  ;;  %v845_v28 = vsel %vm824_vm3, %v843_v21, %v844_v22  ;;  %v413_v32 = vpack.c.bf16 %v396_v19, %v393_v7  ;;  %v397_v33 = vrot.slane %v5385_v8, 1  ;;  %v4623_v57 = vld [vmem:[#allocation2 + $0x2c0] ss:$16 sps:$4 sm:$0xff]   ;;  %v4634_v61 = vld [vmem:[#allocation2 + $0x84] ss:$16 sps:$4 sm:$0xff]   ;;  %s5060_s18 = sshll.u32 %s5159_s17, 4  ;;  %s5061_s18 = int_to_ptr.vmem [resolvable:$false] %s5060_s18 }
  0x3d   : > { %v848_v34 = vsel %vm824_vm3, %v846_v26, %v847_v31  ;;  %v398_v35 = vrot.slane %v349_v9, 1  ;;  %v400_v36 = vrot.slane %v5389_v10, 1  ;;  %v401_v37 = vrot.slane %v351_v12, 1  ;;  %v4626_v59 = vld [vmem:[#allocation2 + $0xa0] ss:$16 sps:$4 sm:$0xff]   ;;  %p5058_p9 = pnand %p5057_p8, %p5244_p5  ;;  %s5062_s19 = scalar_lea.vmem %s5061_s18, 1024 }
  0x3e   : > { %4131 = vmatmul.mubr.msk.bf16.gmra.mxu0 %vm452_vm2, %v412_v63  ;;  %4136 = vmatmul.mubr.msk.bf16.gmra.mxu1 %vm452_vm2, %v412_v63  ;;  %v860_v38 = vpack.c.bf16 %v848_v34, %v845_v28  ;;  %v4167_v43 = vcombine.low %v4161_v62, %v4161_v62  ;;  %v4169_v44 = vcombine.low %v4162_v2, %v4162_v2  ;;  %v4629_v60 = vld [vmem:[#allocation2 + $0x2a0] ss:$16 sps:$4 sm:$0xff]   ;;  %v4637_v62 = vld [vmem:[#allocation2 + $0x284] ss:$16 sps:$4 sm:$0xff]   ;;  %p5063_p11 = scmp.lt.s32.totalorder %s4002_s10, %s5061_s18  ;;  %p5064_p12 = scmp.lt.s32.totalorder %s5062_s19, %s5056_s13 }
  0x3f   : > { %530 = vmatprep.mubr.bf16.mxu0 %v5155_v0  ;;  %603 = vmatprep.mubr.bf16.mxu1 %v5155_v0  ;;  %v399_v39 = vsel %vm378_vm1, %v397_v33, %v398_v35  ;;  %v402_v40 = vsel %vm378_vm1, %v400_v36, %v401_v37  ;;  %v352_v45 = vpack.c.bf16 %v5306_v14, %v5303_v13  ;;  %v4611_v13 = vld [vmem:[%s5998_s1 + $0x68] ss:$16 sps:$4 sm:$0xff]   ;;  %v4632_v63 = vld [vmem:[#allocation2 + $0x80] ss:$16 sps:$4 sm:$0xff]   ;;  %v4640_v2 = vld [vmem:[#allocation2 + $0x64] ss:$16 sps:$4 sm:$0xff]   ;;  %p5059_p10 = pneg %p5058_p9 }
  0x40   : > { %v414_v42 = vpack.c.bf16 %v402_v40, %v399_v39  ;;  %v911_v49 = vsel %vm465_vm0, %v4167_v43, 0  ;;  %v917_v50 = vsel %vm465_vm0, %v4169_v44, 0  ;;  %v353_v14 = vpack.c.bf16 %v5324_v30, %v5321_v29  ;;  %v4616_v30 = vld [vmem:[#allocation2 + $0xe4] ss:$16 sps:$4 sm:$0xff]   ;;  %v4635_v1 = vld [vmem:[#allocation2 + $0x280] ss:$16 sps:$4 sm:$0xff]   ;;  %p5065_p13 = por %p5064_p12, %p5063_p11 }
  0x41   : > { %v354_v52 = vpack.c.bf16 %v5346_v46, %v5335_v41  ;;  %v355_v29 = vpack.c.bf16 %v5389_v10, %v5385_v8  ;;  %v4619_v41 = vld [vmem:[#allocation2 + $0x2e4] ss:$16 sps:$4 sm:$0xff]   ;;  %v4614_v46 = vld [vmem:[#allocation2 + $0xe0] ss:$16 sps:$4 sm:$0xff]  }
  0x42   : > { %v4638_v4 = vld [vmem:[#allocation2 + $0x60] ss:$16 sps:$4 sm:$0xff]   ;;  %v4646_v6 = vld [vmem:[#allocation2 + $0x44] ss:$16 sps:$4 sm:$0xff]   ;;  %p5066_p0 = pnand %p5065_p13, %p5059_p10 }
  0x43   : > { %v4641_v5 = vld [vmem:[#allocation2 + $0x260] ss:$16 sps:$4 sm:$0xff]   ;;  %v4649_v7 = vld [vmem:[#allocation2 + $0x244] ss:$16 sps:$4 sm:$0xff]  }
  0x44   : > { %v4644_v8 = vld [vmem:[#allocation2 + $0x40] ss:$16 sps:$4 sm:$0xff]   ;;  %v4652_v10 = vld [vmem:[#allocation2 + $0x24] ss:$16 sps:$4 sm:$0xff]  }
  0x45   : > { %v4647_v9 = vld [vmem:[#allocation2 + $0x240] ss:$16 sps:$4 sm:$0xff]   ;;  %v4655_v11 = vld [vmem:[#allocation2 + $0x224] ss:$16 sps:$4 sm:$0xff]  }
  0x46   : > { %4132 = vmatmul.mubr.msk.bf16.gmra.mxu0 %vm452_vm2, %v413_v32  ;;  %4137 = vmatmul.mubr.msk.bf16.gmra.mxu1 %vm452_vm2, %v413_v32  ;;  %v4650_v12 = vld [vmem:[#allocation2 + $0x20] ss:$16 sps:$4 sm:$0xff]   ;;  %v4658_v16 = vld [vmem:[#allocation2 + $0x4] ss:$16 sps:$4 sm:$0xff]  }
  0x47   : > { %540 = vmatprep.mubr.bf16.mxu0 %v5155_v0  ;;  %613 = vmatprep.mubr.bf16.mxu1 %v5155_v0  ;;  %v4653_v15 = vld [vmem:[#allocation2 + $0x220] ss:$16 sps:$4 sm:$0xff]   ;;  %v4661_v17 = vld [vmem:[#allocation2 + $0x204] ss:$16 sps:$4 sm:$0xff]  }
  0x48   : > { %v4656_v18 = vld [vmem:[#allocation2] ss:$16 sps:$4 sm:$0xff]   ;;  %v4664_v20 = vld [vmem:[#allocation2 + $0x1e4] ss:$16 sps:$4 sm:$0xff]  }
  0x49   : > { %v4659_v19 = vld [vmem:[#allocation2 + $0x200] ss:$16 sps:$4 sm:$0xff]   ;;  %v4667_v21 = vld [vmem:[#allocation2 + $0x3e4] ss:$16 sps:$4 sm:$0xff]  }
  0x4a   : > { %v4662_v22 = vld [vmem:[#allocation2 + $0x1e0] ss:$16 sps:$4 sm:$0xff]   ;;  %v4670_v24 = vld [vmem:[#allocation2 + $0x1c4] ss:$16 sps:$4 sm:$0xff]  }
  0x4b   : > { %v4673_v25 = vld [vmem:[#allocation2 + $0x3c4] ss:$16 sps:$4 sm:$0xff]   ;;  %v4668_v26 = vld [vmem:[#allocation2 + $0x1c0] ss:$16 sps:$4 sm:$0xff]  }
  0x4c   : > { %v4676_v28 = vld [vmem:[#allocation2 + $0x1a4] ss:$16 sps:$4 sm:$0xff]   ;;  %v4674_v32 = vld [vmem:[#allocation2 + $0x1a0] ss:$16 sps:$4 sm:$0xff]  }
  0x4d   : > { %v4679_v31 = vld [vmem:[#allocation2 + $0x3a4] ss:$16 sps:$4 sm:$0xff]   ;;  %v4677_v33 = vld [vmem:[#allocation2 + $0x3a0] ss:$16 sps:$4 sm:$0xff]  }
  0x4e   : > { %4133 = vmatmul.mubr.msk.bf16.gmra.mxu0 %vm452_vm2, %v414_v42  ;;  %4138 = vmatmul.mubr.msk.bf16.gmra.mxu1 %vm452_vm2, %v414_v42  ;;  %v4682_v34 = vld [vmem:[#allocation2 + $0x184] ss:$16 sps:$4 sm:$0xff]   ;;  %v4680_v36 = vld [vmem:[#allocation2 + $0x180] ss:$16 sps:$4 sm:$0xff]  }
  0x4f   : > { %710 = vmatprep.mubr.bf16.mxu0 %v5155_v0  ;;  %783 = vmatprep.mubr.bf16.mxu1 %v5155_v0  ;;  %v4685_v35 = vld [vmem:[#allocation2 + $0x384] ss:$16 sps:$4 sm:$0xff]   ;;  %v4683_v37 = vld [vmem:[#allocation2 + $0x380] ss:$16 sps:$4 sm:$0xff]  }
  0x50   : > { %v4691_v39 = vld [vmem:[#allocation2 + $0x364] ss:$16 sps:$4 sm:$0xff]   ;;  %v4686_v40 = vld [vmem:[#allocation2 + $0x160] ss:$16 sps:$4 sm:$0xff]  }
  0x51   : > { %v4689_v42 = vld [vmem:[#allocation2 + $0x360] ss:$16 sps:$4 sm:$0xff]   ;;  %v4694_v43 = vld [vmem:[#allocation2 + $0x144] ss:$16 sps:$4 sm:$0xff]  }
  0x52   : > { %v4692_v44 = vld [vmem:[#allocation2 + $0x140] ss:$16 sps:$4 sm:$0xff]  }
  0x56   : > { %4148 = vmatmul.mubr.msk.bf16.vlgmr.msra.gmra.mxu0 %vm452_vm2, %v352_v45  ;;  %4153 = vmatmul.mubr.msk.bf16.vlgmr.msra.gmra.mxu1 %vm452_vm2, %v352_v45  ;;  %v4695_v45 = vld [vmem:[#allocation2 + $0x340] ss:$16 sps:$4 sm:$0xff]  }
  0x57   : > { %935 = vmatpush1.bf16.msra.mxu0 %v911_v49  ;;  %1008 = vmatpush1.bf16.msra.mxu1 %v917_v50  ;;  %v4703_v49 = vld [vmem:[#allocation2 + $0x324] ss:$16 sps:$4 sm:$0xff]  }
  0x58   : > { %720 = vmatprep.mubr.bf16.mxu0 %v5155_v0  ;;  %793 = vmatprep.mubr.bf16.mxu1 %v5155_v0 }
  0x59   : > { %936 = vmatprep.subr.bf16.mxu0 %v4610_v47  ;;  %1009 = vmatprep.subr.bf16.mxu1 %v4613_v48  ;;  %v4697_v47 = vld [vmem:[#allocation2 + $0x344] ss:$16 sps:$4 sm:$0xff]  }
  0x5a   : > { %v4700_v48 = vld [vmem:[#allocation2 + $0x124] ss:$16 sps:$4 sm:$0xff]  }
  0x5b   : > { %937 = vmatpush1.bf16.msra.mxu0 %v4608_v51  ;;  %1010 = vmatpush1.bf16.msra.mxu1 %v4611_v13 }
  0x5c   : > { %3288 = vmatprep.subr.bf16.mxu0 %v4616_v30  ;;  %3329 = vmatprep.subr.bf16.mxu1 %v4619_v41  ;;  %v4706_v30 = vld [vmem:[#allocation2 + $0x104] ss:$16 sps:$4 sm:$0xff]  }
  0x5d   : > { %v4709_v41 = vld [vmem:[#allocation2 + $0x304] ss:$16 sps:$4 sm:$0xff]  }
  0x5e   : > { %4149 = vmatmul.mubr.msk.bf16.gmra.mxu0 %vm452_vm2, %v353_v14  ;;  %4154 = vmatmul.mubr.msk.bf16.gmra.mxu1 %vm452_vm2, %v353_v14 }
  0x5f   : > { %730 = vmatprep.mubr.bf16.mxu0 %v5155_v0  ;;  %803 = vmatprep.mubr.bf16.mxu1 %v5155_v0 }
  0x66   : > { %4150 = vmatmul.mubr.msk.bf16.gmra.mxu0 %vm452_vm2, %v354_v52  ;;  %4155 = vmatmul.mubr.msk.bf16.gmra.mxu1 %vm452_vm2, %v354_v52  ;;  %v4698_v52 = vld [vmem:[#allocation2 + $0x120] ss:$16 sps:$4 sm:$0xff]  }
  0x67   : > { %740 = vmatprep.mubr.bf16.mxu0 %v5155_v0  ;;  %813 = vmatprep.mubr.bf16.mxu1 %v5155_v0 }
  0x6e   : > { %4151 = vmatmul.mubr.msk.bf16.gmra.mxu0 %vm452_vm2, %v355_v29  ;;  %4156 = vmatmul.mubr.msk.bf16.gmra.mxu1 %vm452_vm2, %v355_v29  ;;  %v4701_v29 = vld [vmem:[#allocation2 + $0x320] ss:$16 sps:$4 sm:$0xff]  }
  0x6f   : > { %954 = vmatprep.mubr.bf16.mxu0 %v5155_v0  ;;  %1027 = vmatprep.mubr.bf16.mxu1 %v5155_v0 }
  0x76   : > { %4172 = vmatmul.mubr.msk.bf16.vlgmr.msra.gmra.mxu0 %vm452_vm2, %v5379_v3  ;;  %4177 = vmatmul.mubr.msk.bf16.vlgmr.msra.gmra.mxu1 %vm452_vm2, %v5379_v3  ;;  %v4643_v3 = vld [vmem:[#allocation2 + $0x264] ss:$16 sps:$4 sm:$0xff]  }
  0x77   : > { %964 = vmatprep.mubr.bf16.mxu0 %v5155_v0  ;;  %1037 = vmatprep.mubr.bf16.mxu1 %v5155_v0 }
  0x78   : > { %3289 = vmatpush1.bf16.msra.mxu0 %v4614_v46  ;;  %3330 = vmatpush1.bf16.msra.mxu1 %v4617_v53 }
  0x79   : > { %3290 = vmatprep.subr.bf16.mxu0 %v4622_v54  ;;  %3331 = vmatprep.subr.bf16.mxu1 %v4625_v55 }
  0x7c   : > { %3291 = vmatpush1.bf16.msra.mxu0 %v4620_v56  ;;  %3332 = vmatpush1.bf16.msra.mxu1 %v4623_v57  ;;  %v4704_v56 = vld [vmem:[#allocation2 + $0x100] ss:$16 sps:$4 sm:$0xff]  }
  0x7d   : > { %3333 = vmatprep.subr.bf16.mxu1 %v4631_v58  ;;  %v4707_v57 = vld [vmem:[#allocation2 + $0x300] ss:$16 sps:$4 sm:$0xff]  }
  0x7e   : > { %4173 = vmatmul.mubr.msk.bf16.gmra.mxu0 %vm452_vm2, %v5405_v23  ;;  %4178 = vmatmul.mubr.msk.bf16.gmra.mxu1 %vm452_vm2, %v5405_v23  ;;  %v4665_v23 = vld [vmem:[#allocation2 + $0x3e0] ss:$16 sps:$4 sm:$0xff]  }
  0x7f   : > { %974 = vmatprep.mubr.bf16.mxu0 %v5155_v0  ;;  %1047 = vmatprep.mubr.bf16.mxu1 %v5155_v0 }
  0x80   : > { %3334 = vmatpush1.bf16.msra.mxu1 %v4629_v60 }
  0x81   : > { %3335 = vmatprep.subr.bf16.mxu1 %v4637_v62 }
  0x84   : > { %3336 = vmatpush1.bf16.msra.mxu1 %v4635_v1 }
  0x85   : > { %3337 = vmatprep.subr.bf16.mxu1 %v4643_v3  ;;  %v4715_v3 = vld [vmem:[#allocation2 + $0x6e4] ss:$16 sps:$4 sm:$0xff]  }
  0x86   : > { %4174 = vmatmul.mubr.msk.bf16.gmra.mxu0 %vm452_vm2, %v5410_v27  ;;  %4179 = vmatmul.mubr.msk.bf16.gmra.mxu1 %vm452_vm2, %v5410_v27  ;;  %v4671_v27 = vld [vmem:[#allocation2 + $0x3c0] ss:$16 sps:$4 sm:$0xff]  }
  0x87   : > { %984 = vmatprep.mubr.bf16.mxu0 %v5155_v0  ;;  %1057 = vmatprep.mubr.bf16.mxu1 %v5155_v0  ;;  %v4628_v0 = vld [vmem:[#allocation2 + $0xa4] ss:$16 sps:$4 sm:$0xff]  }
  0x88   : > { %3292 = vmatprep.subr.bf16.mxu0 %v4628_v0  ;;  %3338 = vmatpush1.bf16.msra.mxu1 %v4641_v5 }
  0x89   : > { %3293 = vmatpush1.bf16.msra.mxu0 %v4626_v59  ;;  %3339 = vmatprep.subr.bf16.mxu1 %v4649_v7 }
  0x8a   : > { %3294 = vmatprep.subr.bf16.mxu0 %v4634_v61 }
  0x8c   : > { %3340 = vmatpush1.bf16.msra.mxu1 %v4647_v9 }
  0x8d   : > { %3295 = vmatpush1.bf16.msra.mxu0 %v4632_v63  ;;  %3341 = vmatprep.subr.bf16.mxu1 %v4655_v11  ;;  %v4712_v63 = vld [vmem:[#allocation2 + $0x4e4] ss:$16 sps:$4 sm:$0xff]  }
  0x8e   : > { %4175 = vmatmul.mubr.msk.bf16.gmra.mxu0 %vm452_vm2, %v860_v38  ;;  %4180 = vmatmul.mubr.msk.bf16.gmra.mxu1 %vm452_vm2, %v860_v38  ;;  %v4688_v38 = vld [vmem:[#allocation2 + $0x164] ss:$16 sps:$4 sm:$0xff]  }
  0x8f   : > { %3296 = vmatprep.subr.bf16.mxu0 %v4640_v2 }
  0x90   : > { %3342 = vmatpush1.bf16.msra.mxu1 %v4653_v15 }
  0x91   : > { %3297 = vmatpush1.bf16.msra.mxu0 %v4638_v4  ;;  %3343 = vmatprep.subr.bf16.mxu1 %v4661_v17 }
  0x92   : > { %3298 = vmatprep.subr.bf16.mxu0 %v4646_v6 }
  0x94   : > { %3344 = vmatpush1.bf16.msra.mxu1 %v4659_v19 }
  0x95   : > { %3299 = vmatpush1.bf16.msra.mxu0 %v4644_v8  ;;  %3345 = vmatprep.subr.bf16.mxu1 %v4667_v21 }
  0x96   : > { %3300 = vmatprep.subr.bf16.mxu0 %v4652_v10 }
  0x98   : > { %3346 = vmatpush2.bf16.msra.mxu1 %v4665_v23 }
  0x99   : > { %3301 = vmatpush1.bf16.msra.mxu0 %v4650_v12  ;;  %3347 = vmatprep.subr.bf16.mxu1 %v4673_v25 }
  0x9a   : > { %3302 = vmatprep.subr.bf16.mxu0 %v4658_v16 }
  0x9c   : > { %3348 = vmatpush2.bf16.msra.mxu1 %v4671_v27 }
  0x9d   : > { %3303 = vmatpush1.bf16.msra.mxu0 %v4656_v18  ;;  %3349 = vmatprep.subr.bf16.mxu1 %v4679_v31 }
  0x9e   : > { %3304 = vmatprep.subr.bf16.mxu0 %v4664_v20 }
  0xa0   : > { %3350 = vmatpush2.bf16.msra.mxu1 %v4677_v33 }
  0xa1   : > { %3305 = vmatpush2.bf16.msra.mxu0 %v4662_v22  ;;  %3351 = vmatprep.subr.bf16.mxu1 %v4685_v35 }
  0xa2   : > { %3306 = vmatprep.subr.bf16.mxu0 %v4670_v24 }
  0xa4   : > { %3352 = vmatpush2.bf16.msra.mxu1 %v4683_v37 }
  0xa5   : > { %3307 = vmatpush2.bf16.msra.mxu0 %v4668_v26  ;;  %3353 = vmatprep.subr.bf16.mxu1 %v4691_v39 }
  0xa6   : > { %3308 = vmatprep.subr.bf16.mxu0 %v4676_v28 }
  0xa8   : > { %3354 = vmatpush2.bf16.msra.mxu1 %v4689_v42 }
  0xa9   : > { %3309 = vmatpush2.bf16.msra.mxu0 %v4674_v32  ;;  %3355 = vmatprep.subr.bf16.mxu1 %v4697_v47 }
  0xaa   : > { %3310 = vmatprep.subr.bf16.mxu0 %v4682_v34 }
  0xac   : > { %3356 = vmatpush2.bf16.msra.mxu1 %v4695_v45 }
  0xad   : > { %3311 = vmatpush2.bf16.msra.mxu0 %v4680_v36  ;;  %3357 = vmatprep.subr.bf16.mxu1 %v4703_v49 }
  0xae   : > { %3312 = vmatprep.subr.bf16.mxu0 %v4688_v38 }
  0xb0   : > { %3358 = vmatpush2.bf16.msra.mxu1 %v4701_v29 }
  0xb1   : > { %3313 = vmatpush2.bf16.msra.mxu0 %v4686_v40  ;;  %3359 = vmatprep.subr.bf16.mxu1 %v4709_v41  ;;  %v1102_v40 = vlaneseq }
  0xb2   : > { %3314 = vmatprep.subr.bf16.mxu0 %v4694_v43 }
  0xb3   : > { %v5548_v47 = vshrl.u32 %v1102_v40, 7 }
  0xb4   : > { %3360 = vmatpush2.bf16.msra.mxu1 %v4707_v57 }
  0xb5   : > { %3315 = vmatpush2.bf16.msra.mxu0 %v4692_v44  ;;  %3411 = vmatprep.subr.bf16.mxu1 %v4715_v3 }
  0xb6   : > { %3316 = vmatprep.subr.bf16.mxu0 %v4700_v48 }
  0xb9   : > { %3317 = vmatpush2.bf16.msra.mxu0 %v4698_v52  ;;  %v5156_v52 = vmov 1966171168  }
  0xba   : > { %3318 = vmatprep.subr.bf16.mxu0 %v4706_v30  ;;  %v1251_v29 = vunpack.c.l.s4 %v5156_v52  ;;  %v5157_v30 = vmov 1983009808   ;;  %v1100_v52 = vld [vmem:[%s5999_s2] sm:$0xf] }
  0xbb   : > { %v1444_v41 = vunpack.c.l.s4 %v5157_v30 }
  0xbd   : > { %3319 = vmatpush2.bf16.msra.mxu0 %v4704_v56  ;;  %v5158_v56 = vmov 1935823168   ;;  %v1445_v30 = vunpack.c.0.s8 %v1444_v41 }
  0xbe   : > { %3370 = vmatprep.subr.bf16.mxu0 %v4712_v63  ;;  %v1515_v57 = vunpack.c.l.s4 %v5158_v56 }
  0xf6   : > { %v5484_v50 = vpop.f32.mrf.mxu0  ;;  %v5486_v51 = vpop.f32.mrf.mxu1 }
  0xf8   : > { %v5488_v13 = vpop.f32.mrf.mxu0  ;;  %v5490_v14 = vpop.f32.mrf.mxu1 }
  0xfa   : > { %v5492_v46 = vpop.f32.mrf.mxu0  ;;  %v5494_v53 = vpop.f32.mrf.mxu1 }
  0xfc   : > { %v5496_v54 = vpop.f32.mrf.mxu0  ;;  %v5498_v55 = vpop.f32.mrf.mxu1 }
  0xfe   : > { %v5500_v0 = vpop.f32.mrf.mxu0  ;;  %v5502_v58 = vpop.f32.mrf.mxu1 }
 0x100   : > { %v5504_v59 = vpop.f32.mrf.mxu0  ;;  %v5506_v60 = vpop.f32.mrf.mxu1 }
 0x102   : > { %v5508_v61 = vpop.f32.mrf.mxu0  ;;  %v5510_v62 = vpop.f32.mrf.mxu1 }
 0x104   : > { %v5512_v1 = vpop.f32.mrf.mxu0  ;;  %v5514_v2 = vpop.f32.mrf.mxu1 }
 0x106   : > { %v5516_v4 = vpop.f32.mrf.mxu0  ;;  %v5518_v5 = vpop.f32.mrf.mxu1 }
 0x108   : > { %v5520_v6 = vpop.f32.mrf.mxu0  ;;  %v5522_v7 = vpop.f32.mrf.mxu1 }
 0x109   : > { %6016 = vst [vmem:[#allocation11_spill] sm:$0xff] %v5522_v7 }
 0x10a   : > { %v5524_v8 = vpop.f32.mrf.mxu0  ;;  %v5526_v9 = vpop.f32.mrf.mxu1 }
 0x10b   : > { %6017 = vst [vmem:[#allocation12_spill] sm:$0xff] %v5524_v8  ;;  %6018 = vst [vmem:[#allocation13_spill] sm:$0xff] %v5526_v9  ;;  %v6031_v9 = vsub.s32 3, %v5548_v47 }
 0x10c   : > { %v5528_v10 = vpop.f32.mrf.mxu0  ;;  %v5530_v11 = vpop.f32.mrf.mxu1 }
 0x10d   : > { %6019 = vst [vmem:[#allocation14_spill] sm:$0xff] %v5528_v10  ;;  %6020 = vst [vmem:[#allocation15_spill] sm:$0xff] %v5530_v11  ;;  %v5571_v8 = vrot.slane %v1100_v52, %v6031_v9 }
 0x10e   : > { %v5532_v12 = vpop.f32.mrf.mxu0  ;;  %v5534_v15 = vpop.f32.mrf.mxu1 }
 0x10f   : > { %6021 = vst [vmem:[#allocation16_spill] sm:$0xff] %v5532_v12  ;;  %6022 = vst [vmem:[#allocation17_spill] sm:$0xff] %v5534_v15  ;;  %v1516_v15 = vunpack.c.0.s8 %v1515_v57 }
 0x110   : > { %v5536_v16 = vpop.f32.mrf.mxu0  ;;  %v5538_v17 = vpop.f32.mrf.mxu1 }
 0x111   : > { %6023 = vst [vmem:[#allocation18_spill] sm:$0xff] %v5536_v16  ;;  %6024 = vst [vmem:[#allocation19_spill] sm:$0xff] %v5538_v17  ;;  %v1252_v16 = vunpack.c.0.s8 %v1251_v29 }
 0x112   : > { %v5540_v18 = vpop.f32.mrf.mxu0  ;;  %v5542_v19 = vpop.f32.mrf.mxu1 }
 0x113   : > { %6025 = vst [vmem:[#allocation20_spill] sm:$0xff] %v5540_v18  ;;  %6026 = vst [vmem:[#allocation21_spill] sm:$0xff] %v5542_v19  ;;  %v6029_v18 = vsub.s32 1, %v5548_v47  ;;  %v5575_v7 = vsub.s32 %v1252_v16, %v5548_v47 }
 0x114   : > { %v5544_v20 = vpop.f32.mrf.mxu0  ;;  %v5546_v21 = vpop.f32.mrf.mxu1 }
 0x115   : > { %6027 = vst [vmem:[#allocation22_spill] sm:$0xff] %v5544_v20  ;;  %6028 = vst [vmem:[#allocation23_spill] sm:$0xff] %v5546_v21  ;;  %v6006_v21 = vsub.s32 0, %v5548_v47  ;;  %v6007_v20 = vsub.s32 2, %v5548_v47  ;;  %v5567_v10 = vrot.slane %v1100_v52, %v6029_v18 }
 0x116   : > { %v712_v22 = vpop.f32.mrf.mxu0  ;;  %v785_v23 = vpop.f32.mrf.mxu1  ;;  %6032 = vst [vmem:[#allocation25_spill] sm:$0xff] %v5575_v7 }
 0x117   : > { %v5559_v11 = vrot.slane %v1100_v52, %v6006_v21  ;;  %v5563_v19 = vrot.slane %v1100_v52, %v6007_v20  ;;  %6030 = vst [vmem:[#allocation24_spill] sm:$0xff] %v5567_v10  ;;  %v713_v29 = vadd.f32 %v712_v22, %v5484_v50  ;;  %v5578_v21 = vsub.s32 %v1445_v30, %v5548_v47 }
 0x118   : > { %v714_v24 = vpop.f32.mrf.mxu0  ;;  %v787_v25 = vpop.f32.mrf.mxu1  ;;  %v5581_v20 = vsub.s32 %v1516_v15, %v5548_v47  ;;  %v786_v18 = vadd.f32 %v785_v23, %v5486_v51  ;;  %v6034_v23 = vld [vmem:[#allocation11_spill] sm:$0xff] }
 0x119   : > { %6033 = vst [vmem:[#allocation26_spill] sm:$0xff] %v5578_v21  ;;  %v715_v10 = vadd.f32 %v714_v24, %v5488_v13  ;;  %v788_v9 = vadd.f32 %v787_v25, %v5490_v14 }
 0x11a   : > { %v716_v26 = vpop.f32.mrf.mxu0  ;;  %v789_v27 = vpop.f32.mrf.mxu1 }
 0x11b   : > { %v717_v52 = vadd.f32 %v716_v26, %v5492_v46  ;;  %v790_v50 = vadd.f32 %v789_v27, %v5494_v53 }
 0x11c   : > { %v718_v28 = vpop.f32.mrf.mxu0  ;;  %v791_v31 = vpop.f32.mrf.mxu1 }
 0x11d   : > { %v719_v22 = vadd.f32 %v718_v28, %v5496_v54  ;;  %v792_v16 = vadd.f32 %v791_v31, %v5498_v55 }
 0x11e   : > { %v722_v32 = vpop.f32.mrf.mxu0  ;;  %v795_v33 = vpop.f32.mrf.mxu1 }
 0x11f   : > { %v723_v30 = vadd.f32 %v722_v32, %v5500_v0  ;;  %v796_v15 = vadd.f32 %v795_v33, %v5502_v58 }
 0x120   : > { %v724_v34 = vpop.f32.mrf.mxu0  ;;  %v797_v35 = vpop.f32.mrf.mxu1 }
 0x121   : > { %v5595_v51 = vadd.f32 %v724_v34, %v5504_v59  ;;  %v5598_v13 = vadd.f32 %v797_v35, %v5506_v60  ;;  %v6038_v34 = vld [vmem:[#allocation15_spill] sm:$0xff] }
 0x122   : > { %v726_v36 = vpop.f32.mrf.mxu0  ;;  %v799_v37 = vpop.f32.mrf.mxu1 }
 0x123   : > { %v5601_v14 = vadd.f32 %v726_v36, %v5508_v61  ;;  %v5604_v46 = vadd.f32 %v799_v37, %v5510_v62  ;;  %v6039_v36 = vld [vmem:[#allocation16_spill] sm:$0xff] }
 0x124   : > { %v728_v38 = vpop.f32.mrf.mxu0  ;;  %v801_v39 = vpop.f32.mrf.mxu1 }
 0x125   : > { %v5607_v53 = vadd.f32 %v728_v38, %v5512_v1  ;;  %v5610_v54 = vadd.f32 %v801_v39, %v5514_v2  ;;  %v6035_v1 = vld [vmem:[#allocation12_spill] sm:$0xff]  ;;  %v6036_v2 = vld [vmem:[#allocation13_spill] sm:$0xff] }
 0x126   : > { %v732_v42 = vpop.f32.mrf.mxu0  ;;  %v805_v43 = vpop.f32.mrf.mxu1  ;;  %v6040_v38 = vld [vmem:[#allocation17_spill] sm:$0xff] }
 0x127   : > { %v5613_v55 = vadd.f32 %v732_v42, %v5516_v4  ;;  %v5616_v59 = vadd.f32 %v805_v43, %v5518_v5  ;;  %v6037_v4 = vld [vmem:[#allocation14_spill] sm:$0xff] }
 0x128   : > { %v734_v44 = vpop.f32.mrf.mxu0  ;;  %v807_v45 = vpop.f32.mrf.mxu1  ;;  %v6041_v42 = vld [vmem:[#allocation18_spill] sm:$0xff] }
 0x129   : > { %v5619_v60 = vadd.f32 %v734_v44, %v5520_v6  ;;  %v5622_v24 = vadd.f32 %v807_v45, %v6034_v23 }
 0x12a   : > { %v736_v48 = vpop.f32.mrf.mxu0  ;;  %v809_v49 = vpop.f32.mrf.mxu1 }
 0x12b   : > { %v5625_v25 = vadd.f32 %v736_v48, %v6035_v1  ;;  %v5628_v26 = vadd.f32 %v809_v49, %v6036_v2  ;;  %v6045_v2 = vld [vmem:[#allocation21_spill] sm:$0xff] }
 0x12c   : > { %v738_v63 = vpop.f32.mrf.mxu0  ;;  %v811_v3 = vpop.f32.mrf.mxu1 }
 0x12d   : > { %v5631_v27 = vadd.f32 %v738_v63, %v6037_v4  ;;  %v5636_v35 = vadd.f32 %v811_v3, %v6038_v34  ;;  %v6042_v63 = vld [vmem:[#allocation24_spill] sm:$0xff] }
 0x12e   : > { %v742_v40 = vpop.f32.mrf.mxu0  ;;  %v815_v17 = vpop.f32.mrf.mxu1 }
 0x12f   : > { %v5639_v37 = vadd.f32 %v742_v40, %v6039_v36  ;;  %v5642_v39 = vadd.f32 %v815_v17, %v6040_v38 }
 0x130   : > { %v744_v56 = vpop.f32.mrf.mxu0  ;;  %v817_v12 = vpop.f32.mrf.mxu1 }
 0x131   : > { %v5645_v43 = vadd.f32 %v744_v56, %v6041_v42 }
 0x132   : > { %v746_v41 = vpop.f32.mrf.mxu0  ;;  %v819_v57 = vpop.f32.mrf.mxu1 }
 0x133   : > { %v5656_v4 = vadd.f32 %v819_v57, %v6045_v2 }
 0x134   : > { %v748_v21 = vpop.f32.mrf.mxu0  ;;  %v5591_v7 = vpop.f32.mrf.mxu1 }
 0x136   : > { %v956_v0 = vpop.f32.mrf.mxu0  ;;  %v1029_v58 = vpop.f32.mrf.mxu1 }
 0x137   : > { %v1068_v61 = vadd.f32 %v956_v0, %v713_v29  ;;  %v1070_v62 = vadd.f32 %v1029_v58, %v786_v18  ;;  %v6043_v18 = vld [vmem:[#allocation19_spill] sm:$0xff] }
 0x138   : > { %v958_v28 = vpop.f32.mrf.mxu0  ;;  %v1031_v5 = vpop.f32.mrf.mxu1  ;;  %v5650_v3 = vadd.f32 %v817_v12, %v6043_v18  ;;  %v6047_v18 = vld [vmem:[#allocation25_spill] sm:$0xff] }
 0x139   : > { %v1122_v31 = vadd.f32 %v5559_v11, %v1068_v61  ;;  %v1124_v6 = vadd.f32 %v5563_v19, %v1070_v62  ;;  %v1069_v32 = vadd.f32 %v958_v28, %v715_v10  ;;  %v1071_v33 = vadd.f32 %v1031_v5, %v788_v9  ;;  %v6044_v9 = vld [vmem:[#allocation20_spill] sm:$0xff] }
 0x13a   : > { %v960_v44 = vpop.f32.mrf.mxu0  ;;  %v1033_v45 = vpop.f32.mrf.mxu1  ;;  %v5653_v40 = vadd.f32 %v746_v41, %v6044_v9 }
 0x13b   : > { %v1154_v48 = vmax.f32 %v1122_v31, 0.0  ;;  %v1156_v49 = vmax.f32 %v1124_v6, 0.0  ;;  %v1123_v29 = vadd.f32 %v6042_v63, %v1069_v32  ;;  %v1125_v10 = vadd.f32 %v5571_v8, %v1071_v33  ;;  %v6046_v33 = vld [vmem:[#allocation22_spill] sm:$0xff] }
 0x13c   : > { %v1072_v0 = vadd.f32 %v960_v44, %v717_v52  ;;  %v1074_v17 = vadd.f32 %v1033_v45, %v790_v50  ;;  %v962_v58 = vpop.f32.mrf.mxu0  ;;  %v1035_v61 = vpop.f32.mrf.mxu1  ;;  %v5662_v34 = vadd.f32 %v748_v21, %v6046_v33 }
 0x13d   : > { %v1186_v56 = vmax.f32 %v1154_v48, %v1156_v49  ;;  %v1155_v62 = vmax.f32 %v1123_v29, 0.0  ;;  %v1157_v23 = vmax.f32 %v1125_v10, 0.0  ;;  %v1073_v1 = vadd.f32 %v962_v58, %v719_v22 }
 0x13e   : > { %v1126_v28 = vadd.f32 %v5559_v11, %v1072_v0  ;;  %v1128_v5 = vadd.f32 %v5563_v19, %v1074_v17  ;;  %v1075_v12 = vadd.f32 %v1035_v61, %v792_v16  ;;  %v966_v31 = vpop.f32.mrf.mxu0  ;;  %v1039_v6 = vpop.f32.mrf.mxu1 }
 0x13f   : > { %v1187_v41 = vmax.f32 %v1155_v62, %v1157_v23  ;;  %v1127_v52 = vadd.f32 %v6042_v63, %v1073_v1  ;;  %v1076_v50 = vadd.f32 %v966_v31, %v723_v30  ;;  %v1078_v32 = vadd.f32 %v1039_v6, %v796_v15 }
 0x140   : > { %v1158_v36 = vmax.f32 %v1126_v28, 0.0  ;;  %v1160_v22 = vmax.f32 %v1128_v5, 0.0  ;;  %v1129_v57 = vadd.f32 %v5571_v8, %v1075_v12  ;;  %v968_v38 = vpop.f32.mrf.mxu0  ;;  %v1041_v42 = vpop.f32.mrf.mxu1 }
 0x141   : > { %v1218_v44 = vcombine.low %v1186_v56, %v1187_v41  ;;  %v1219_v45 = vcombine.high %v1186_v56, %v1187_v41  ;;  %v1159_v48 = vmax.f32 %v1127_v52, 0.0  ;;  %v1130_v16 = vadd.f32 %v5559_v11, %v1076_v50 }
 0x142   : > { %v1188_v49 = vmax.f32 %v1158_v36, %v1160_v22  ;;  %v1161_v29 = vmax.f32 %v1129_v57, 0.0  ;;  %v1132_v10 = vadd.f32 %v5563_v19, %v1078_v32  ;;  %v1077_v30 = vadd.f32 %v968_v38, %v5595_v51  ;;  %v970_v15 = vpop.f32.mrf.mxu0  ;;  %v1043_v21 = vpop.f32.mrf.mxu1 }
 0x143   : > { %v1256_v9 = vrot.slane %v1218_v44, %v6047_v18  ;;  %v1263_v0 = vrot.slane %v1219_v45, %v6047_v18  ;;  %v1162_v17 = vmax.f32 %v1130_v16, 0.0  ;;  %v1079_v58 = vadd.f32 %v1041_v42, %v5598_v13 }
 0x144   : > { %v1189_v61 = vmax.f32 %v1159_v48, %v1161_v29  ;;  %v1164_v56 = vmax.f32 %v1132_v10, 0.0  ;;  %v1131_v62 = vadd.f32 %v6042_v63, %v1077_v30  ;;  %v1080_v23 = vadd.f32 %v970_v15, %v5601_v14  ;;  %v972_v1 = vpop.f32.mrf.mxu0  ;;  %v1045_v2 = vpop.f32.mrf.mxu1 }
 0x145   : > { %v1378_v28 = vrot.slane %v1256_v9, 4  ;;  %v1379_v5 = vrot.slane %v1263_v0, 4  ;;  %v1133_v51 = vadd.f32 %v5571_v8, %v1079_v58  ;;  %v1082_v12 = vadd.f32 %v1043_v21, %v5604_v46 }
 0x146   : > { %v1220_v31 = vcombine.low %v1188_v49, %v1189_v61  ;;  %v1221_v6 = vcombine.high %v1188_v49, %v1189_v61  ;;  %v1190_v41 = vmax.f32 %v1162_v17, %v1164_v56  ;;  %v1163_v52 = vmax.f32 %v1131_v62, 0.0  ;;  %v976_v50 = vpop.f32.mrf.mxu0  ;;  %v1049_v13 = vpop.f32.mrf.mxu1 }
 0x147   : > { %v1410_v32 = vmax.f32 %v1256_v9, %v1378_v28  ;;  %v1411_v33 = vmax.f32 %v1263_v0, %v1379_v5  ;;  %v1165_v36 = vmax.f32 %v1133_v51, 0.0  ;;  %v1134_v22 = vadd.f32 %v5559_v11, %v1080_v23  ;;  %v6048_v0 = vld [vmem:[#allocation23_spill] sm:$0xff] }
 0x148   : > { %v1270_v14 = vrot.slane %v1220_v31, %v6047_v18  ;;  %v1277_v57 = vrot.slane %v1221_v6, %v6047_v18  ;;  %v1136_v38 = vadd.f32 %v5563_v19, %v1082_v12  ;;  %v1081_v42 = vadd.f32 %v972_v1, %v5607_v53  ;;  %v978_v46 = vpop.f32.mrf.mxu0  ;;  %v1051_v44 = vpop.f32.mrf.mxu1 }
 0x149   : > { %v1442_v45 = vcombine.low %v1410_v32, %v1411_v33  ;;  %v1191_v48 = vmax.f32 %v1163_v52, %v1165_v36  ;;  %v1166_v16 = vmax.f32 %v1134_v22, 0.0  ;;  %v1083_v49 = vadd.f32 %v1045_v2, %v5610_v54  ;;  %v6049_v22 = vld [vmem:[#allocation26_spill] sm:$0xff] }
 0x14a   : > { %v1380_v29 = vrot.slane %v1270_v14, 4  ;;  %v1381_v10 = vrot.slane %v1277_v57, 4  ;;  %v1168_v30 = vmax.f32 %v1136_v38, 0.0  ;;  %v1135_v15 = vadd.f32 %v6042_v63, %v1081_v42  ;;  %v980_v21 = vpop.f32.mrf.mxu0  ;;  %v1053_v9 = vpop.f32.mrf.mxu1 }
 0x14b   : > { %v5684_v17 = vadd.f32 %v5591_v7, %v6048_v0  ;;  %v1222_v58 = vcombine.low %v1190_v41, %v1191_v48  ;;  %v1223_v53 = vcombine.high %v1190_v41, %v1191_v48  ;;  %v1137_v61 = vadd.f32 %v5571_v8, %v1083_v49 }
 0x14c   : > { %v1412_v56 = vmax.f32 %v1270_v14, %v1380_v29  ;;  %v1413_v62 = vmax.f32 %v1277_v57, %v1381_v10  ;;  %v1192_v23 = vmax.f32 %v1166_v16, %v1168_v30  ;;  %v1167_v1 = vmax.f32 %v1135_v15, 0.0  ;;  %v982_v51 = vpop.f32.mrf.mxu0  ;;  %v1055_v41 = vpop.f32.mrf.mxu1 }
 0x14d   : > { %v1284_v54 = vrot.slane %v1222_v58, %v6047_v18  ;;  %v1291_v2 = vrot.slane %v1223_v53, %v6047_v18  ;;  %v1169_v28 = vmax.f32 %v1137_v61, 0.0  ;;  %v1084_v5 = vadd.f32 %v976_v50, %v5613_v55 }
 0x14e   : > { %v1450_v12 = vcombine.low %v1412_v56, %v1413_v62  ;;  %v1086_v7 = vadd.f32 %v1049_v13, %v5616_v59  ;;  %v1085_v31 = vadd.f32 %v978_v46, %v5619_v60  ;;  %v1087_v6 = vadd.f32 %v1051_v44, %v5622_v24  ;;  %v986_v24 = vpop.f32.mrf.mxu0  ;;  %v1059_v16 = vpop.f32.mrf.mxu1 }
 0x14f   : > { %v1382_v52 = vrot.slane %v1284_v54, 4  ;;  %v1383_v32 = vrot.slane %v1291_v2, 4  ;;  %v1193_v33 = vmax.f32 %v1167_v1, %v1169_v28  ;;  %v1138_v36 = vadd.f32 %v5559_v11, %v1084_v5 }
 0x150   : > { %v5695_v14 = vrot.slane %v1442_v45, %v6049_v22  ;;  %v1140_v57 = vadd.f32 %v5563_v19, %v1086_v7  ;;  %v1139_v55 = vadd.f32 %v6042_v63, %v1085_v31  ;;  %v1141_v50 = vadd.f32 %v5571_v8, %v1087_v6 }
 0x151   : > { %v1414_v59 = vmax.f32 %v1284_v54, %v1382_v52  ;;  %v1415_v13 = vmax.f32 %v1291_v2, %v1383_v32  ;;  %v1224_v60 = vcombine.low %v1192_v23, %v1193_v33  ;;  %v1225_v38 = vcombine.high %v1192_v23, %v1193_v33  ;;  %v988_v23 = vpop.f32.mrf.mxu0 }
 0x152   : > { %v1170_v42 = vmax.f32 %v1138_v36, 0.0  ;;  %v1172_v46 = vmax.f32 %v1140_v57, 0.0  ;;  %v1171_v44 = vmax.f32 %v1139_v55, 0.0  ;;  %v1173_v48 = vmax.f32 %v1141_v50, 0.0 }
 0x153   : > { %v1458_v49 = vcombine.low %v1414_v59, %v1415_v13  ;;  %v1298_v45 = vrot.slane %v1224_v60, %v6047_v18  ;;  %v1305_v29 = vrot.slane %v1225_v38, %v6047_v18  ;;  %v1088_v10 = vadd.f32 %v980_v21, %v5625_v25  ;;  %v1061_v21 = vpop.f32.mrf.mxu1  ;;  %v990_v33 = vpop.f32.mrf.mxu0 }
 0x154   : > { %v1194_v30 = vmax.f32 %v1170_v42, %v1172_v46  ;;  %v1195_v15 = vmax.f32 %v1171_v44, %v1173_v48  ;;  %v1090_v0 = vadd.f32 %v1053_v9, %v5628_v26  ;;  %v1089_v58 = vadd.f32 %v982_v51, %v5631_v27 }
 0x155   : > { %v5706_v53 = vrot.slane %v1450_v12, %v6049_v22  ;;  %v1384_v61 = vrot.slane %v1298_v45, 4  ;;  %v1385_v56 = vrot.slane %v1305_v29, 4  ;;  %v1142_v62 = vadd.f32 %v5559_v11, %v1088_v10 }
 0x156   : > { %v1226_v1 = vcombine.low %v1194_v30, %v1195_v15  ;;  %v1227_v54 = vcombine.high %v1194_v30, %v1195_v15  ;;  %v1144_v2 = vadd.f32 %v5563_v19, %v1090_v0  ;;  %v1143_v25 = vadd.f32 %v6042_v63, %v1089_v58 }
 0x157   : > { %v1416_v28 = vmax.f32 %v1298_v45, %v1384_v61  ;;  %v1417_v5 = vmax.f32 %v1305_v29, %v1385_v56  ;;  %v1174_v26 = vmax.f32 %v1142_v62, 0.0  ;;  %v1091_v27 = vadd.f32 %v1055_v41, %v5636_v35  ;;  %v1063_v35 = vpop.f32.mrf.mxu1 }
 0x158   : > { %v1312_v9 = vrot.slane %v1226_v1, %v6047_v18  ;;  %v1319_v51 = vrot.slane %v1227_v54, %v6047_v18  ;;  %v1176_v12 = vmax.f32 %v1144_v2, 0.0  ;;  %v1175_v7 = vmax.f32 %v1143_v25, 0.0 }
 0x159   : > { %v1466_v31 = vcombine.low %v1416_v28, %v1417_v5  ;;  %v1145_v6 = vadd.f32 %v5571_v8, %v1091_v27  ;;  %v1092_v52 = vadd.f32 %v986_v24, %v5639_v37  ;;  %v1094_v32 = vadd.f32 %v1059_v16, %v5642_v39  ;;  %v1065_v10 = vpop.f32.mrf.mxu1 }
 0x15a   : > { %v1386_v36 = vrot.slane %v1312_v9, 4  ;;  %v1387_v57 = vrot.slane %v1319_v51, 4  ;;  %v1196_v55 = vmax.f32 %v1174_v26, %v1176_v12  ;;  %v1093_v50 = vadd.f32 %v988_v23, %v5645_v43  ;;  %v992_v43 = vpop.f32.mrf.mxu0 }
 0x15b   : > { %v1465_v41 = vrot.slane %v1458_v49, %v6049_v22  ;;  %v1177_v59 = vmax.f32 %v1145_v6, 0.0  ;;  %v1146_v13 = vadd.f32 %v5559_v11, %v1092_v52  ;;  %v1148_v60 = vadd.f32 %v5563_v19, %v1094_v32 }
 0x15c   : > { %v1418_v38 = vmax.f32 %v1312_v9, %v1386_v36  ;;  %v1419_v42 = vmax.f32 %v1319_v51, %v1387_v57  ;;  %v1147_v37 = vadd.f32 %v6042_v63, %v1093_v50  ;;  %v1095_v39 = vadd.f32 %v1061_v21, %v5650_v3 }
 0x15d   : > { %v1197_v24 = vmax.f32 %v1175_v7, %v1177_v59  ;;  %v1178_v46 = vmax.f32 %v1146_v13, 0.0  ;;  %v1180_v44 = vmax.f32 %v1148_v60, 0.0  ;;  %v1096_v48 = vadd.f32 %v990_v33, %v5653_v40 }
 0x15e   : > { %v1474_v16 = vcombine.low %v1418_v38, %v1419_v42  ;;  %v1179_v45 = vmax.f32 %v1147_v37, 0.0  ;;  %v1149_v49 = vadd.f32 %v5571_v8, %v1095_v39  ;;  %v1098_v29 = vadd.f32 %v1063_v35, %v5656_v4 }
 0x15f   : > { %v1228_v30 = vcombine.low %v1196_v55, %v1197_v24  ;;  %v1229_v15 = vcombine.high %v1196_v55, %v1197_v24  ;;  %v1198_v0 = vmax.f32 %v1178_v46, %v1180_v44  ;;  %v1150_v58 = vadd.f32 %v5559_v11, %v1096_v48 }
 0x160   : > { %v1473_v3 = vrot.slane %v1466_v31, %v6049_v22  ;;  %v1181_v61 = vmax.f32 %v1149_v49, 0.0  ;;  %v1152_v56 = vadd.f32 %v5563_v19, %v1098_v29  ;;  %v1097_v40 = vadd.f32 %v992_v43, %v5662_v34 }
 0x161   : > { %v1326_v62 = vrot.slane %v1228_v30, %v6047_v18  ;;  %v1333_v23 = vrot.slane %v1229_v15, %v6047_v18  ;;  %v1182_v1 = vmax.f32 %v1150_v58, 0.0  ;;  %v1099_v4 = vadd.f32 %v1065_v10, %v5684_v17 }
 0x162   : > { %v1481_v54 = vrot.slane %v1474_v16, %v6049_v22  ;;  %v1199_v2 = vmax.f32 %v1179_v45, %v1181_v61  ;;  %v1184_v25 = vmax.f32 %v1152_v56, 0.0  ;;  %v1151_v11 = vadd.f32 %v6042_v63, %v1097_v40 }
 0x163   : > { %v1388_v21 = vrot.slane %v1326_v62, 4  ;;  %v1389_v28 = vrot.slane %v1333_v23, 4  ;;  %v1153_v5 = vadd.f32 %v5571_v8, %v1099_v4  ;;  %v1527_v19 = vrot.slane %v5706_v53, %v5581_v20 }
 0x164   : > { %v1230_v34 = vcombine.low %v1198_v0, %v1199_v2  ;;  %v1231_v26 = vcombine.high %v1198_v0, %v1199_v2  ;;  %v1200_v27 = vmax.f32 %v1182_v1, %v1184_v25  ;;  %v1183_v9 = vmax.f32 %v1151_v11, 0.0 }
 0x165   : > { %v1420_v51 = vmax.f32 %v1326_v62, %v1388_v21  ;;  %v1421_v12 = vmax.f32 %v1333_v23, %v1389_v28  ;;  %v1185_v17 = vmax.f32 %v1153_v5, 0.0  ;;  %v1520_v7 = vrot.slane %v5695_v14, %v5581_v20 }
 0x166   : > { %v1340_v31 = vrot.slane %v1230_v34, %v6047_v18  ;;  %v1347_v63 = vrot.slane %v1231_v26, %v6047_v18  ;;  %v1534_v6 = vrot.slane %v1465_v41, %v5581_v20  ;;  %v1541_v8 = vrot.slane %v1473_v3, %v5581_v20 }
 0x167   : > { %v1482_v52 = vcombine.low %v1420_v51, %v1421_v12  ;;  %v1201_v53 = vmax.f32 %v1183_v9, %v1185_v17  ;;  %v1578_v32 = vcombine.low %v1520_v7, %v1527_v19  ;;  %v1579_v33 = vcombine.high %v1520_v7, %v1527_v19 }
 0x168   : > { %v1390_v36 = vrot.slane %v1340_v31, 4  ;;  %v1391_v57 = vrot.slane %v1347_v63, 4  ;;  %v1580_v55 = vcombine.low %v1534_v6, %v1541_v8  ;;  %v1581_v50 = vcombine.high %v1534_v6, %v1541_v8 }
 0x169   : > { %v1489_v35 = vrot.slane %v1482_v52, %v6049_v22  ;;  %v1232_v59 = vcombine.low %v1200_v27, %v1201_v53  ;;  %v1233_v14 = vcombine.high %v1200_v27, %v1201_v53  ;;  %v1548_v13 = vrot.slane %v1481_v54, %v5581_v20 }
 0x16a   : > { %v1422_v60 = vmax.f32 %v1340_v31, %v1390_v36  ;;  %v1423_v38 = vmax.f32 %v1347_v63, %v1391_v57  ;;  %v1592_v41 = vrot.slane %v1578_v32, %v6047_v18  ;;  %v1606_v42 = vrot.slane %v1580_v55, %v6047_v18  ;;  %v4713_v36 = vld [vmem:[#allocation2 + $0x6e0] ss:$16 sps:$4 sm:$0xff]  }
 0x16b   : > { %v1354_v37 = vrot.slane %v1232_v59, %v6047_v18  ;;  %v1361_v39 = vrot.slane %v1233_v14, %v6047_v18  ;;  %v1555_v24 = vrot.slane %v1489_v35, %v5581_v20  ;;  %v1613_v46 = vrot.slane %v1581_v50, %v6047_v18  ;;  %v4721_v50 = vld [vmem:[#allocation2 + $0x6c4] ss:$16 sps:$4 sm:$0xff]   ;;  %v4716_v14 = vld [vmem:[#allocation2 + $0x4c0] ss:$16 sps:$4 sm:$0xff]  }
 0x16c   : > { %v1490_v44 = vcombine.low %v1422_v60, %v1423_v38  ;;  %v1642_v48 = vcombine.low %v1592_v41, %v1606_v42  ;;  %v1643_v43 = vcombine.high %v1592_v41, %v1606_v42  ;;  %v1599_v16 = vrot.slane %v1579_v33, %v6047_v18  ;;  %v4710_v33 = vld [vmem:[#allocation2 + $0x4e0] ss:$16 sps:$4 sm:$0xff]   ;;  %v4724_v60 = vld [vmem:[#allocation2 + $0x4a4] ss:$16 sps:$4 sm:$0xff]  }
 0x16d   : > { %v1392_v45 = vrot.slane %v1354_v37, 4  ;;  %v1393_v49 = vrot.slane %v1361_v39, 4  ;;  %v1582_v29 = vcombine.low %v1548_v13, %v1555_v24  ;;  %v1583_v10 = vcombine.high %v1548_v13, %v1555_v24  ;;  %v4719_v13 = vld [vmem:[#allocation2 + $0x6c0] ss:$16 sps:$4 sm:$0xff]   ;;  %v4727_v38 = vld [vmem:[#allocation2 + $0x6a4] ss:$16 sps:$4 sm:$0xff]  }
 0x16e   : > { %v1645_v30 = vcombine.high %v1599_v16, %v1613_v46  ;;  %v1644_v58 = vcombine.low %v1599_v16, %v1613_v46  ;;  %v1497_v3 = vrot.slane %v1490_v44, %v6049_v22  ;;  %v1656_v34 = vrot.slane %v1642_v48, %v6047_v18  ;;  %v4722_v41 = vld [vmem:[#allocation2 + $0x4a0] ss:$16 sps:$4 sm:$0xff]   ;;  %v4736_v44 = vld [vmem:[#allocation2 + $0x464] ss:$16 sps:$4 sm:$0xff]  }
 0x16f   : > { %v1424_v15 = vmax.f32 %v1354_v37, %v1392_v45  ;;  %v1425_v0 = vmax.f32 %v1361_v39, %v1393_v49  ;;  %v1620_v54 = vrot.slane %v1582_v29, %v6047_v18  ;;  %v1627_v25 = vrot.slane %v1583_v10, %v6047_v18  ;;  %v4725_v42 = vld [vmem:[#allocation2 + $0x6a0] ss:$16 sps:$4 sm:$0xff]   ;;  %v4730_v37 = vld [vmem:[#allocation2 + $0x484] ss:$16 sps:$4 sm:$0xff]  }
 0x170   : > { %v1663_v56 = vrot.slane %v1644_v58, %v6047_v18  ;;  %v1562_v62 = vrot.slane %v1497_v3, %v5581_v20  ;;  %v1677_v51 = vrot.slane %v1645_v30, %v6047_v18  ;;  %v4733_v39 = vld [vmem:[#allocation2 + $0x684] ss:$16 sps:$4 sm:$0xff]   ;;  %v4728_v24 = vld [vmem:[#allocation2 + $0x480] ss:$16 sps:$4 sm:$0xff]  }
 0x171   : > { %v1498_v61 = vcombine.low %v1424_v15, %v1425_v0  ;;  %v4731_v46 = vld [vmem:[#allocation2 + $0x680] ss:$16 sps:$4 sm:$0xff]   ;;  %v4739_v48 = vld [vmem:[#allocation2 + $0x664] ss:$16 sps:$4 sm:$0xff]  }
 0x172   : > { %v4737_v16 = vld [vmem:[#allocation2 + $0x660] ss:$16 sps:$4 sm:$0xff]   ;;  %v4742_v45 = vld [vmem:[#allocation2 + $0x444] ss:$16 sps:$4 sm:$0xff]  }
 0x173   : > { %v1505_v40 = vrot.slane %v1498_v61, %v6049_v22  ;;  %v1670_v22 = vrot.slane %v1643_v43, %v6047_v18  ;;  %v4734_v43 = vld [vmem:[#allocation2 + $0x460] ss:$16 sps:$4 sm:$0xff]   ;;  %v4745_v49 = vld [vmem:[#allocation2 + $0x644] ss:$16 sps:$4 sm:$0xff]  }
 0x174   : > { %v4740_v29 = vld [vmem:[#allocation2 + $0x440] ss:$16 sps:$4 sm:$0xff]   ;;  %v4748_v30 = vld [vmem:[#allocation2 + $0x424] ss:$16 sps:$4 sm:$0xff]  }
 0x175   : > { %v1569_v23 = vrot.slane %v1505_v40, %v5581_v20  ;;  %v4743_v10 = vld [vmem:[#allocation2 + $0x640] ss:$16 sps:$4 sm:$0xff]   ;;  %v4751_v15 = vld [vmem:[#allocation2 + $0x624] ss:$16 sps:$4 sm:$0xff]  }
 0x176   : > { %v4746_v0 = vld [vmem:[#allocation2 + $0x420] ss:$16 sps:$4 sm:$0xff]   ;;  %v4754_v3 = vld [vmem:[#allocation2 + $0x404] ss:$16 sps:$4 sm:$0xff]  }
 0x177   : > { %v1584_v1 = vcombine.low %v1562_v62, %v1569_v23  ;;  %v1585_v4 = vcombine.high %v1562_v62, %v1569_v23  ;;  %v4749_v58 = vld [vmem:[#allocation2 + $0x620] ss:$16 sps:$4 sm:$0xff]   ;;  %v4757_v61 = vld [vmem:[#allocation2 + $0x604] ss:$16 sps:$4 sm:$0xff]  }
 0x178   : > { %v4755_v40 = vld [vmem:[#allocation2 + $0x600] ss:$16 sps:$4 sm:$0xff]   ;;  %v4760_v62 = vld [vmem:[#allocation2 + $0x5e4] ss:$16 sps:$4 sm:$0xff]  }
 0x179   : > { %v1634_v2 = vrot.slane %v1584_v1, %v6047_v18  ;;  %v1641_v11 = vrot.slane %v1585_v4, %v6047_v18  ;;  %v4763_v23 = vld [vmem:[#allocation2 + $0x7e4] ss:$16 sps:$4 sm:$0xff]   ;;  %v4758_v1 = vld [vmem:[#allocation2 + $0x5e0] ss:$16 sps:$4 sm:$0xff]  }
 0x17a   : > { %v4761_v4 = vld [vmem:[#allocation2 + $0x7e0] ss:$16 sps:$4 sm:$0xff]  }
 0x17b   : > { %v1646_v21 = vcombine.low %v1620_v54, %v1634_v2  ;;  %v1647_v28 = vcombine.high %v1620_v54, %v1634_v2  ;;  %v1649_v5 = vcombine.high %v1627_v25, %v1641_v11  ;;  %v1648_v19 = vcombine.low %v1627_v25, %v1641_v11  ;;  %v4766_v54 = vld [vmem:[#allocation2 + $0x5c4] ss:$16 sps:$4 sm:$0xff]   ;;  %v4764_v25 = vld [vmem:[#allocation2 + $0x5c0] ss:$16 sps:$4 sm:$0xff]  }
 0x17c   : > { %v4769_v2 = vld [vmem:[#allocation2 + $0x7c4] ss:$16 sps:$4 sm:$0xff]   ;;  %v4767_v11 = vld [vmem:[#allocation2 + $0x7c0] ss:$16 sps:$4 sm:$0xff]  }
 0x17d   : > { %v1698_v20 = vrot.slane %v1647_v28, %v6047_v18  ;;  %v1684_v26 = vrot.slane %v1646_v21, %v6047_v18  ;;  %v1705_v27 = vrot.slane %v1649_v5, %v6047_v18  ;;  %v1691_v9 = vrot.slane %v1648_v19, %v6047_v18  ;;  %v4718_v18 = vld [vmem:[#allocation2 + $0x4c4] ss:$16 sps:$4 sm:$0xff]   ;;  %v4770_v5 = vld [vmem:[#allocation2 + $0x5a0] ss:$16 sps:$4 sm:$0xff]  }
 0x17e   : > { %v4772_v21 = vld [vmem:[#allocation2 + $0x5a4] ss:$16 sps:$4 sm:$0xff]   ;;  %v4773_v19 = vld [vmem:[#allocation2 + $0x7a0] ss:$16 sps:$4 sm:$0xff]  }
 0x17f   : > { %v1710_v12 = vcombine.low %v1670_v22, %v1698_v20  ;;  %v1711_v17 = vcombine.high %v1670_v22, %v1698_v20  ;;  %v1706_v7 = vcombine.low %v1656_v34, %v1684_v26  ;;  %v1707_v31 = vcombine.high %v1656_v34, %v1684_v26  ;;  %v4775_v28 = vld [vmem:[#allocation2 + $0x7a4] ss:$16 sps:$4 sm:$0xff]   ;;  %v4776_v20 = vld [vmem:[#allocation2 + $0x580] ss:$16 sps:$4 sm:$0xff]  }
 0x180   : > { %v1712_v63 = vcombine.low %v1677_v51, %v1705_v27  ;;  %v1713_v6 = vcombine.high %v1677_v51, %v1705_v27  ;;  %v5769_v8 = vcombine.low %v1663_v56, %v1691_v9  ;;  %v5771_v52 = vcombine.high %v1663_v56, %v1691_v9  ;;  %v4752_v56 = vld [vmem:[#allocation2 + $0x400] ss:$16 sps:$4 sm:$0xff]   ;;  %v4778_v22 = vld [vmem:[#allocation2 + $0x584] ss:$16 sps:$4 sm:$0xff]  }
 0x181   : > { %v5773_v53 = vpack.c.bf16 %v1710_v12, %v1710_v12  ;;  %v5775_v32 = vpack.c.bf16 %v1711_v17, %v1711_v17  ;;  %v5777_v57 = vpack.c.bf16 %v1706_v7, %v1706_v7  ;;  %v5779_v55 = vpack.c.bf16 %v1707_v31, %v1707_v31  ;;  %v4781_v34 = vld [vmem:[#allocation2 + $0x784] ss:$16 sps:$4 sm:$0xff]   ;;  %v4779_v26 = vld [vmem:[#allocation2 + $0x780] ss:$16 sps:$4 sm:$0xff]  }
 0x182   : > { %v5785_v35 = vpack.c.bf16 %v1712_v63, %v1712_v63  ;;  %v5787_v59 = vpack.c.bf16 %v1713_v6, %v1713_v6  ;;  %v4784_v27 = vld [vmem:[#allocation2 + $0x564] ss:$16 sps:$4 sm:$0xff]   ;;  %v4782_v51 = vld [vmem:[#allocation2 + $0x560] ss:$16 sps:$4 sm:$0xff]  }
 0x183   : > { %3320 = vmatprep.mubr.bf16.mxu0 %v5773_v53  ;;  %3361 = vmatprep.mubr.bf16.mxu1 %v5775_v32  ;;  %v4787_v9 = vld [vmem:[#allocation2 + $0x764] ss:$16 sps:$4 sm:$0xff]   ;;  %v4785_v12 = vld [vmem:[#allocation2 + $0x760] ss:$16 sps:$4 sm:$0xff]  }
 0x184   : > { %3321 = vmatmul.mubr.bf16.vlgmr.msra.gmra.mxu0 %v5777_v57  ;;  %3362 = vmatmul.mubr.bf16.vlgmr.msra.gmra.mxu1 %v5779_v55  ;;  %v4790_v17 = vld [vmem:[#allocation2 + $0x544] ss:$16 sps:$4 sm:$0xff]   ;;  %v4788_v31 = vld [vmem:[#allocation2 + $0x540] ss:$16 sps:$4 sm:$0xff]  }
 0x185   : > { %3371 = vmatpush1.bf16.msra.mxu0 %v4710_v33  ;;  %3412 = vmatpush1.bf16.msra.mxu1 %v4713_v36  ;;  %v4793_v7 = vld [vmem:[#allocation2 + $0x744] ss:$16 sps:$4 sm:$0xff]   ;;  %v4791_v63 = vld [vmem:[#allocation2 + $0x740] ss:$16 sps:$4 sm:$0xff]  }
 0x186   : > { %3402 = vmatprep.mubr.bf16.mxu0 %v5785_v35  ;;  %3443 = vmatprep.mubr.bf16.mxu1 %v5787_v59  ;;  %v4796_v6 = vld [vmem:[#allocation2 + $0x524] ss:$16 sps:$4 sm:$0xff]   ;;  %v4794_v36 = vld [vmem:[#allocation2 + $0x520] ss:$16 sps:$4 sm:$0xff]  }
 0x187   : > { %3372 = vmatprep.subr.bf16.mxu0 %v4718_v18  ;;  %3413 = vmatprep.subr.bf16.mxu1 %v4721_v50  ;;  %v4799_v33 = vld [vmem:[#allocation2 + $0x724] ss:$16 sps:$4 sm:$0xff]   ;;  %v4797_v18 = vld [vmem:[#allocation2 + $0x720] ss:$16 sps:$4 sm:$0xff]  }
 0x188   : > { %v4802_v50 = vld [vmem:[#allocation2 + $0x504] ss:$16 sps:$4 sm:$0xff]  }
 0x189   : > { %3373 = vmatpush1.bf16.msra.mxu0 %v4716_v14  ;;  %3414 = vmatpush1.bf16.msra.mxu1 %v4719_v13  ;;  %v4805_v14 = vld [vmem:[#allocation2 + $0x704] ss:$16 sps:$4 sm:$0xff]   ;;  %v4800_v13 = vld [vmem:[#allocation2 + $0x500] ss:$16 sps:$4 sm:$0xff]  }
 0x18a   : > { %3374 = vmatprep.subr.bf16.mxu0 %v4724_v60  ;;  %3415 = vmatprep.subr.bf16.mxu1 %v4727_v38  ;;  %v4803_v60 = vld [vmem:[#allocation2 + $0x700] ss:$16 sps:$4 sm:$0xff]   ;;  %v4808_v38 = vld [vmem:[#allocation2 + $0xec] ss:$16 sps:$4 sm:$0xff]  }
 0x18d   : > { %3375 = vmatpush1.bf16.msra.mxu0 %v4722_v41  ;;  %3416 = vmatpush1.bf16.msra.mxu1 %v4725_v42  ;;  %v4811_v41 = vld [vmem:[#allocation2 + $0x2ec] ss:$16 sps:$4 sm:$0xff]   ;;  %v4806_v42 = vld [vmem:[#allocation2 + $0xe8] ss:$16 sps:$4 sm:$0xff]  }
 0x18e   : > { %3376 = vmatprep.subr.bf16.mxu0 %v4730_v37  ;;  %3417 = vmatprep.subr.bf16.mxu1 %v4733_v39  ;;  %v5793_v37 = vpack.c.bf16 %v5769_v8, %v5769_v8  ;;  %v5797_v39 = vpack.c.bf16 %v5771_v52, %v5771_v52  ;;  %v4815_v8 = vld [vmem:[#allocation2 + $0x2c8] ss:$16 sps:$4 sm:$0xff]   ;;  %v4823_v52 = vld [vmem:[#allocation2 + $0x2ac] ss:$16 sps:$4 sm:$0xff]  }
 0x191   : > { %3377 = vmatpush1.bf16.msra.mxu0 %v4728_v24  ;;  %3418 = vmatpush1.bf16.msra.mxu1 %v4731_v46  ;;  %v4809_v24 = vld [vmem:[#allocation2 + $0x2e8] ss:$16 sps:$4 sm:$0xff]   ;;  %v4814_v46 = vld [vmem:[#allocation2 + $0xcc] ss:$16 sps:$4 sm:$0xff]  }
 0x192   : > { %3378 = vmatprep.subr.bf16.mxu0 %v4736_v44  ;;  %3419 = vmatprep.subr.bf16.mxu1 %v4739_v48  ;;  %v4817_v44 = vld [vmem:[#allocation2 + $0x2cc] ss:$16 sps:$4 sm:$0xff]   ;;  %v4812_v48 = vld [vmem:[#allocation2 + $0xc8] ss:$16 sps:$4 sm:$0xff]  }
 0x195   : > { %3379 = vmatpush1.bf16.msra.mxu0 %v4734_v43  ;;  %3420 = vmatpush1.bf16.msra.mxu1 %v4737_v16  ;;  %v4820_v43 = vld [vmem:[#allocation2 + $0xac] ss:$16 sps:$4 sm:$0xff]   ;;  %v4818_v16 = vld [vmem:[#allocation2 + $0xa8] ss:$16 sps:$4 sm:$0xff]  }
 0x196   : > { %3380 = vmatprep.subr.bf16.mxu0 %v4742_v45  ;;  %3421 = vmatprep.subr.bf16.mxu1 %v4745_v49  ;;  %v4821_v45 = vld [vmem:[#allocation2 + $0x2a8] ss:$16 sps:$4 sm:$0xff]   ;;  %v4826_v49 = vld [vmem:[#allocation2 + $0x8c] ss:$16 sps:$4 sm:$0xff]  }
 0x199   : > { %3381 = vmatpush1.bf16.msra.mxu0 %v4740_v29  ;;  %3422 = vmatpush1.bf16.msra.mxu1 %v4743_v10  ;;  %v4829_v29 = vld [vmem:[#allocation2 + $0x28c] ss:$16 sps:$4 sm:$0xff]   ;;  %v4824_v10 = vld [vmem:[#allocation2 + $0x88] ss:$16 sps:$4 sm:$0xff]  }
 0x19a   : > { %3382 = vmatprep.subr.bf16.mxu0 %v4748_v30  ;;  %3423 = vmatprep.subr.bf16.mxu1 %v4751_v15  ;;  %v4832_v30 = vld [vmem:[#allocation2 + $0x6c] ss:$16 sps:$4 sm:$0xff]   ;;  %v4830_v15 = vld [vmem:[#allocation2 + $0x68] ss:$16 sps:$4 sm:$0xff]  }
 0x19d   : > { %3383 = vmatpush1.bf16.msra.mxu0 %v4746_v0  ;;  %3424 = vmatpush1.bf16.msra.mxu1 %v4749_v58  ;;  %v4833_v0 = vld [vmem:[#allocation2 + $0x268] ss:$16 sps:$4 sm:$0xff]   ;;  %v4838_v58 = vld [vmem:[#allocation2 + $0x4c] ss:$16 sps:$4 sm:$0xff]  }
 0x19e   : > { %3384 = vmatprep.subr.bf16.mxu0 %v4754_v3  ;;  %3425 = vmatprep.subr.bf16.mxu1 %v4757_v61  ;;  %v4841_v3 = vld [vmem:[#allocation2 + $0x24c] ss:$16 sps:$4 sm:$0xff]   ;;  %v4836_v61 = vld [vmem:[#allocation2 + $0x48] ss:$16 sps:$4 sm:$0xff]  }
 0x1a1   : > { %3385 = vmatpush1.bf16.msra.mxu0 %v4752_v56  ;;  %3426 = vmatpush1.bf16.msra.mxu1 %v4755_v40  ;;  %v4839_v56 = vld [vmem:[#allocation2 + $0x248] ss:$16 sps:$4 sm:$0xff]   ;;  %v4844_v40 = vld [vmem:[#allocation2 + $0x2c] ss:$16 sps:$4 sm:$0xff]  }
 0x1a2   : > { %3386 = vmatprep.subr.bf16.mxu0 %v4760_v62  ;;  %3427 = vmatprep.subr.bf16.mxu1 %v4763_v23  ;;  %v4847_v62 = vld [vmem:[#allocation2 + $0x22c] ss:$16 sps:$4 sm:$0xff]   ;;  %v4842_v23 = vld [vmem:[#allocation2 + $0x28] ss:$16 sps:$4 sm:$0xff]  }
 0x1a5   : > { %3387 = vmatpush2.bf16.msra.mxu0 %v4758_v1  ;;  %3428 = vmatpush2.bf16.msra.mxu1 %v4761_v4  ;;  %v4845_v1 = vld [vmem:[#allocation2 + $0x228] ss:$16 sps:$4 sm:$0xff]   ;;  %v4850_v4 = vld [vmem:[#allocation2 + $0xc] ss:$16 sps:$4 sm:$0xff]  }
 0x1a6   : > { %3388 = vmatprep.subr.bf16.mxu0 %v4766_v54  ;;  %3429 = vmatprep.subr.bf16.mxu1 %v4769_v2  ;;  %v4853_v54 = vld [vmem:[#allocation2 + $0x20c] ss:$16 sps:$4 sm:$0xff]   ;;  %v4848_v2 = vld [vmem:[#allocation2 + $0x8] ss:$16 sps:$4 sm:$0xff]  }
 0x1a9   : > { %3389 = vmatpush2.bf16.msra.mxu0 %v4764_v25  ;;  %3430 = vmatpush2.bf16.msra.mxu1 %v4767_v11  ;;  %v4851_v25 = vld [vmem:[#allocation2 + $0x208] ss:$16 sps:$4 sm:$0xff]   ;;  %v4856_v11 = vld [vmem:[#allocation2 + $0x1ec] ss:$16 sps:$4 sm:$0xff]  }
 0x1aa   : > { %3390 = vmatprep.subr.bf16.mxu0 %v4772_v21  ;;  %3431 = vmatprep.subr.bf16.mxu1 %v4775_v28  ;;  %v4859_v21 = vld [vmem:[#allocation2 + $0x3ec] ss:$16 sps:$4 sm:$0xff]   ;;  %v4854_v28 = vld [vmem:[#allocation2 + $0x1e8] ss:$16 sps:$4 sm:$0xff]  }
 0x1ad   : > { %3391 = vmatpush2.bf16.msra.mxu0 %v4770_v5  ;;  %3432 = vmatpush2.bf16.msra.mxu1 %v4773_v19  ;;  %v4857_v5 = vld [vmem:[#allocation2 + $0x3e8] ss:$16 sps:$4 sm:$0xff]   ;;  %v4862_v19 = vld [vmem:[#allocation2 + $0x1cc] ss:$16 sps:$4 sm:$0xff]  }
 0x1ae   : > { %3392 = vmatprep.subr.bf16.mxu0 %v4778_v22  ;;  %3433 = vmatprep.subr.bf16.mxu1 %v4781_v34  ;;  %v4865_v22 = vld [vmem:[#allocation2 + $0x3cc] ss:$16 sps:$4 sm:$0xff]   ;;  %v4860_v34 = vld [vmem:[#allocation2 + $0x1c8] ss:$16 sps:$4 sm:$0xff]  }
 0x1b1   : > { %3393 = vmatpush2.bf16.msra.mxu0 %v4776_v20  ;;  %3434 = vmatpush2.bf16.msra.mxu1 %v4779_v26  ;;  %v4863_v20 = vld [vmem:[#allocation2 + $0x3c8] ss:$16 sps:$4 sm:$0xff]   ;;  %v4868_v26 = vld [vmem:[#allocation2 + $0x1ac] ss:$16 sps:$4 sm:$0xff]  }
 0x1b2   : > { %3394 = vmatprep.subr.bf16.mxu0 %v4784_v27  ;;  %3435 = vmatprep.subr.bf16.mxu1 %v4787_v9  ;;  %v4871_v27 = vld [vmem:[#allocation2 + $0x3ac] ss:$16 sps:$4 sm:$0xff]   ;;  %v4866_v9 = vld [vmem:[#allocation2 + $0x1a8] ss:$16 sps:$4 sm:$0xff]  }
 0x1b5   : > { %3395 = vmatpush2.bf16.msra.mxu0 %v4782_v51  ;;  %3436 = vmatpush2.bf16.msra.mxu1 %v4785_v12  ;;  %v4869_v51 = vld [vmem:[#allocation2 + $0x3a8] ss:$16 sps:$4 sm:$0xff]   ;;  %v4874_v12 = vld [vmem:[#allocation2 + $0x18c] ss:$16 sps:$4 sm:$0xff]  }
 0x1b6   : > { %3396 = vmatprep.subr.bf16.mxu0 %v4790_v17  ;;  %3437 = vmatprep.subr.bf16.mxu1 %v4793_v7  ;;  %v4877_v17 = vld [vmem:[#allocation2 + $0x38c] ss:$16 sps:$4 sm:$0xff]   ;;  %v4872_v7 = vld [vmem:[#allocation2 + $0x188] ss:$16 sps:$4 sm:$0xff]  }
 0x1b9   : > { %3397 = vmatpush2.bf16.msra.mxu0 %v4788_v31  ;;  %3438 = vmatpush2.bf16.msra.mxu1 %v4791_v63  ;;  %v4875_v31 = vld [vmem:[#allocation2 + $0x388] ss:$16 sps:$4 sm:$0xff]   ;;  %v4880_v63 = vld [vmem:[#allocation2 + $0x16c] ss:$16 sps:$4 sm:$0xff]  }
 0x1ba   : > { %3398 = vmatprep.subr.bf16.mxu0 %v4796_v6  ;;  %3439 = vmatprep.subr.bf16.mxu1 %v4799_v33  ;;  %v4883_v6 = vld [vmem:[#allocation2 + $0x36c] ss:$16 sps:$4 sm:$0xff]   ;;  %v4878_v33 = vld [vmem:[#allocation2 + $0x168] ss:$16 sps:$4 sm:$0xff]  }
 0x1bd   : > { %3399 = vmatpush2.bf16.msra.mxu0 %v4794_v36  ;;  %3440 = vmatpush2.bf16.msra.mxu1 %v4797_v18  ;;  %v4881_v36 = vld [vmem:[#allocation2 + $0x368] ss:$16 sps:$4 sm:$0xff]   ;;  %v4886_v18 = vld [vmem:[#allocation2 + $0x14c] ss:$16 sps:$4 sm:$0xff]  }
 0x1be   : > { %3400 = vmatprep.subr.bf16.mxu0 %v4802_v50  ;;  %3441 = vmatprep.subr.bf16.mxu1 %v4805_v14  ;;  %v4889_v50 = vld [vmem:[#allocation2 + $0x34c] ss:$16 sps:$4 sm:$0xff]   ;;  %v4884_v14 = vld [vmem:[#allocation2 + $0x148] ss:$16 sps:$4 sm:$0xff]  }
 0x1c1   : > { %3401 = vmatpush2.bf16.msra.mxu0 %v4800_v13  ;;  %3442 = vmatpush2.bf16.msra.mxu1 %v4803_v60  ;;  %v4887_v13 = vld [vmem:[#allocation2 + $0x348] ss:$16 sps:$4 sm:$0xff]   ;;  %v4892_v60 = vld [vmem:[#allocation2 + $0x12c] ss:$16 sps:$4 sm:$0xff]  }
 0x1c2   : > { %3452 = vmatprep.subr.bf16.mxu0 %v4808_v38  ;;  %3493 = vmatprep.subr.bf16.mxu1 %v4811_v41  ;;  %v4895_v38 = vld [vmem:[#allocation2 + $0x32c] ss:$16 sps:$4 sm:$0xff]   ;;  %v4890_v41 = vld [vmem:[#allocation2 + $0x128] ss:$16 sps:$4 sm:$0xff]  }
 0x1c4   : > { %3403 = vmatmul.mubr.bf16.vlgmr.msra.gmra.mxu0 %v5793_v37  ;;  %3444 = vmatmul.mubr.bf16.vlgmr.msra.gmra.mxu1 %v5797_v39 }
 0x1c5   : > { %3453 = vmatpush1.bf16.msra.mxu0 %v4806_v42  ;;  %3484 = vmatprep.mubr.bf16.mxu0 %v5773_v53  ;;  %v4827_v53 = vld [vmem:[#allocation2 + $0x288] ss:$16 sps:$4 sm:$0xff]  }
 0x1c6   : > { %3494 = vmatpush1.bf16.msra.mxu1 %v4809_v24  ;;  %3525 = vmatprep.mubr.bf16.mxu1 %v5775_v32  ;;  %v4835_v32 = vld [vmem:[#allocation2 + $0x26c] ss:$16 sps:$4 sm:$0xff]   ;;  %v4893_v42 = vld [vmem:[#allocation2 + $0x328] ss:$16 sps:$4 sm:$0xff]  }
 0x1c7   : > { %3454 = vmatprep.subr.bf16.mxu0 %v4814_v46  ;;  %3495 = vmatprep.subr.bf16.mxu1 %v4817_v44  ;;  %v4898_v24 = vld [vmem:[#allocation2 + $0x10c] ss:$16 sps:$4 sm:$0xff]   ;;  %v4896_v44 = vld [vmem:[#allocation2 + $0x108] ss:$16 sps:$4 sm:$0xff]  }
 0x1c8   : > { %v4901_v46 = vld [vmem:[#allocation2 + $0x30c] ss:$16 sps:$4 sm:$0xff]  }
 0x1c9   : > { %3455 = vmatpush1.bf16.msra.mxu0 %v4812_v48  ;;  %v4899_v48 = vld [vmem:[#allocation2 + $0x308] ss:$16 sps:$4 sm:$0xff]  }
 0x1ca   : > { %3496 = vmatpush1.bf16.msra.mxu1 %v4815_v8  ;;  %3456 = vmatprep.subr.bf16.mxu0 %v4820_v43  ;;  %v4904_v8 = vld [vmem:[#allocation2 + $0x4ec] ss:$16 sps:$4 sm:$0xff]  }
 0x1cb   : > { %3497 = vmatprep.subr.bf16.mxu1 %v4823_v52  ;;  %v4907_v43 = vld [vmem:[#allocation2 + $0x6ec] ss:$16 sps:$4 sm:$0xff]   ;;  %v4902_v52 = vld [vmem:[#allocation2 + $0x4e8] ss:$16 sps:$4 sm:$0xff]  }
 0x1cd   : > { %3457 = vmatpush1.bf16.msra.mxu0 %v4818_v16  ;;  %v4905_v16 = vld [vmem:[#allocation2 + $0x6e8] ss:$16 sps:$4 sm:$0xff]  }
 0x1ce   : > { %3498 = vmatpush1.bf16.msra.mxu1 %v4821_v45  ;;  %3458 = vmatprep.subr.bf16.mxu0 %v4826_v49  ;;  %v4910_v45 = vld [vmem:[#allocation2 + $0x4cc] ss:$16 sps:$4 sm:$0xff]  }
 0x1cf   : > { %3499 = vmatprep.subr.bf16.mxu1 %v4829_v29  ;;  %v4913_v49 = vld [vmem:[#allocation2 + $0x6cc] ss:$16 sps:$4 sm:$0xff]   ;;  %v4908_v29 = vld [vmem:[#allocation2 + $0x4c8] ss:$16 sps:$4 sm:$0xff]  }
 0x1d1   : > { %3459 = vmatpush1.bf16.msra.mxu0 %v4824_v10  ;;  %v4911_v10 = vld [vmem:[#allocation2 + $0x6c8] ss:$16 sps:$4 sm:$0xff]  }
 0x1d2   : > { %3500 = vmatpush1.bf16.msra.mxu1 %v4827_v53  ;;  %3460 = vmatprep.subr.bf16.mxu0 %v4832_v30  ;;  %v4916_v53 = vld [vmem:[#allocation2 + $0x4ac] ss:$16 sps:$4 sm:$0xff]  }
 0x1d3   : > { %3501 = vmatprep.subr.bf16.mxu1 %v4835_v32  ;;  %v4919_v30 = vld [vmem:[#allocation2 + $0x6ac] ss:$16 sps:$4 sm:$0xff]   ;;  %v4914_v32 = vld [vmem:[#allocation2 + $0x4a8] ss:$16 sps:$4 sm:$0xff]  }
 0x1d5   : > { %3461 = vmatpush1.bf16.msra.mxu0 %v4830_v15  ;;  %v4922_v15 = vld [vmem:[#allocation2 + $0x48c] ss:$16 sps:$4 sm:$0xff]  }
 0x1d6   : > { %3502 = vmatpush1.bf16.msra.mxu1 %v4833_v0  ;;  %3462 = vmatprep.subr.bf16.mxu0 %v4838_v58  ;;  %v4920_v0 = vld [vmem:[#allocation2 + $0x488] ss:$16 sps:$4 sm:$0xff]   ;;  %v4928_v58 = vld [vmem:[#allocation2 + $0x46c] ss:$16 sps:$4 sm:$0xff]  }
 0x1d7   : > { %3503 = vmatprep.subr.bf16.mxu1 %v4841_v3  ;;  %v4931_v3 = vld [vmem:[#allocation2 + $0x66c] ss:$16 sps:$4 sm:$0xff]  }
 0x1d9   : > { %3463 = vmatpush1.bf16.msra.mxu0 %v4836_v61  ;;  %v4929_v61 = vld [vmem:[#allocation2 + $0x668] ss:$16 sps:$4 sm:$0xff]  }
 0x1da   : > { %3504 = vmatpush1.bf16.msra.mxu1 %v4839_v56  ;;  %3464 = vmatprep.subr.bf16.mxu0 %v4844_v40  ;;  %v4934_v56 = vld [vmem:[#allocation2 + $0x44c] ss:$16 sps:$4 sm:$0xff]  }
 0x1db   : > { %3505 = vmatprep.subr.bf16.mxu1 %v4847_v62  ;;  %v4937_v40 = vld [vmem:[#allocation2 + $0x64c] ss:$16 sps:$4 sm:$0xff]   ;;  %v4932_v62 = vld [vmem:[#allocation2 + $0x448] ss:$16 sps:$4 sm:$0xff]  }
 0x1dd   : > { %3465 = vmatpush1.bf16.msra.mxu0 %v4842_v23  ;;  %v4935_v23 = vld [vmem:[#allocation2 + $0x648] ss:$16 sps:$4 sm:$0xff]  }
 0x1de   : > { %3506 = vmatpush1.bf16.msra.mxu1 %v4845_v1  ;;  %3466 = vmatprep.subr.bf16.mxu0 %v4850_v4  ;;  %v4940_v1 = vld [vmem:[#allocation2 + $0x42c] ss:$16 sps:$4 sm:$0xff]  }
 0x1df   : > { %3507 = vmatprep.subr.bf16.mxu1 %v4853_v54  ;;  %v4943_v4 = vld [vmem:[#allocation2 + $0x62c] ss:$16 sps:$4 sm:$0xff]   ;;  %v4938_v54 = vld [vmem:[#allocation2 + $0x428] ss:$16 sps:$4 sm:$0xff]  }
 0x1e1   : > { %3467 = vmatpush1.bf16.msra.mxu0 %v4848_v2  ;;  %v4941_v2 = vld [vmem:[#allocation2 + $0x628] ss:$16 sps:$4 sm:$0xff]  }
 0x1e2   : > { %3508 = vmatpush1.bf16.msra.mxu1 %v4851_v25  ;;  %3468 = vmatprep.subr.bf16.mxu0 %v4856_v11  ;;  %v4946_v25 = vld [vmem:[#allocation2 + $0x40c] ss:$16 sps:$4 sm:$0xff]  }
 0x1e3   : > { %3509 = vmatprep.subr.bf16.mxu1 %v4859_v21  ;;  %v4949_v11 = vld [vmem:[#allocation2 + $0x60c] ss:$16 sps:$4 sm:$0xff]   ;;  %v4944_v21 = vld [vmem:[#allocation2 + $0x408] ss:$16 sps:$4 sm:$0xff]  }
 0x1e5   : > { %3469 = vmatpush2.bf16.msra.mxu0 %v4854_v28  ;;  %v4947_v28 = vld [vmem:[#allocation2 + $0x608] ss:$16 sps:$4 sm:$0xff]  }
 0x1e6   : > { %3510 = vmatpush2.bf16.msra.mxu1 %v4857_v5  ;;  %3470 = vmatprep.subr.bf16.mxu0 %v4862_v19  ;;  %v4952_v5 = vld [vmem:[#allocation2 + $0x5ec] ss:$16 sps:$4 sm:$0xff]  }
 0x1e7   : > { %3511 = vmatprep.subr.bf16.mxu1 %v4865_v22  ;;  %v4955_v19 = vld [vmem:[#allocation2 + $0x7ec] ss:$16 sps:$4 sm:$0xff]   ;;  %v4950_v22 = vld [vmem:[#allocation2 + $0x5e8] ss:$16 sps:$4 sm:$0xff]  }
 0x1e9   : > { %3471 = vmatpush2.bf16.msra.mxu0 %v4860_v34  ;;  %v4953_v34 = vld [vmem:[#allocation2 + $0x7e8] ss:$16 sps:$4 sm:$0xff]  }
 0x1ea   : > { %3512 = vmatpush2.bf16.msra.mxu1 %v4863_v20  ;;  %3472 = vmatprep.subr.bf16.mxu0 %v4868_v26  ;;  %v4958_v20 = vld [vmem:[#allocation2 + $0x5cc] ss:$16 sps:$4 sm:$0xff]  }
 0x1eb   : > { %3513 = vmatprep.subr.bf16.mxu1 %v4871_v27  ;;  %v4961_v26 = vld [vmem:[#allocation2 + $0x7cc] ss:$16 sps:$4 sm:$0xff]   ;;  %v4956_v27 = vld [vmem:[#allocation2 + $0x5c8] ss:$16 sps:$4 sm:$0xff]  }
 0x1ed   : > { %3473 = vmatpush2.bf16.msra.mxu0 %v4866_v9  ;;  %v4959_v9 = vld [vmem:[#allocation2 + $0x7c8] ss:$16 sps:$4 sm:$0xff]  }
 0x1ee   : > { %3514 = vmatpush2.bf16.msra.mxu1 %v4869_v51  ;;  %3474 = vmatprep.subr.bf16.mxu0 %v4874_v12  ;;  %v4964_v51 = vld [vmem:[#allocation2 + $0x5ac] ss:$16 sps:$4 sm:$0xff]  }
 0x1ef   : > { %3515 = vmatprep.subr.bf16.mxu1 %v4877_v17  ;;  %v4967_v12 = vld [vmem:[#allocation2 + $0x7ac] ss:$16 sps:$4 sm:$0xff]   ;;  %v4962_v17 = vld [vmem:[#allocation2 + $0x5a8] ss:$16 sps:$4 sm:$0xff]  }
 0x1f1   : > { %3475 = vmatpush2.bf16.msra.mxu0 %v4872_v7  ;;  %v4965_v7 = vld [vmem:[#allocation2 + $0x7a8] ss:$16 sps:$4 sm:$0xff]  }
 0x1f2   : > { %3516 = vmatpush2.bf16.msra.mxu1 %v4875_v31  ;;  %3476 = vmatprep.subr.bf16.mxu0 %v4880_v63  ;;  %v4970_v31 = vld [vmem:[#allocation2 + $0x58c] ss:$16 sps:$4 sm:$0xff]  }
 0x1f3   : > { %3517 = vmatprep.subr.bf16.mxu1 %v4883_v6  ;;  %v4973_v63 = vld [vmem:[#allocation2 + $0x78c] ss:$16 sps:$4 sm:$0xff]   ;;  %v4968_v6 = vld [vmem:[#allocation2 + $0x588] ss:$16 sps:$4 sm:$0xff]  }
 0x1f5   : > { %3477 = vmatpush2.bf16.msra.mxu0 %v4878_v33  ;;  %v4971_v33 = vld [vmem:[#allocation2 + $0x788] ss:$16 sps:$4 sm:$0xff]  }
 0x1f6   : > { %3518 = vmatpush2.bf16.msra.mxu1 %v4881_v36  ;;  %3478 = vmatprep.subr.bf16.mxu0 %v4886_v18  ;;  %v4976_v36 = vld [vmem:[#allocation2 + $0x56c] ss:$16 sps:$4 sm:$0xff]  }
 0x1f7   : > { %3519 = vmatprep.subr.bf16.mxu1 %v4889_v50  ;;  %v4979_v18 = vld [vmem:[#allocation2 + $0x76c] ss:$16 sps:$4 sm:$0xff]   ;;  %v4974_v50 = vld [vmem:[#allocation2 + $0x568] ss:$16 sps:$4 sm:$0xff]  }
 0x1f9   : > { %3479 = vmatpush2.bf16.msra.mxu0 %v4884_v14  ;;  %v4977_v14 = vld [vmem:[#allocation2 + $0x768] ss:$16 sps:$4 sm:$0xff]  }
 0x1fa   : > { %3520 = vmatpush2.bf16.msra.mxu1 %v4887_v13  ;;  %3480 = vmatprep.subr.bf16.mxu0 %v4892_v60  ;;  %v4982_v13 = vld [vmem:[#allocation2 + $0x54c] ss:$16 sps:$4 sm:$0xff]  }
 0x1fb   : > { %3521 = vmatprep.subr.bf16.mxu1 %v4895_v38  ;;  %v4985_v60 = vld [vmem:[#allocation2 + $0x74c] ss:$16 sps:$4 sm:$0xff]   ;;  %v4980_v38 = vld [vmem:[#allocation2 + $0x548] ss:$16 sps:$4 sm:$0xff]  }
 0x1fd   : > { %3481 = vmatpush2.bf16.msra.mxu0 %v4890_v41  ;;  %v4983_v41 = vld [vmem:[#allocation2 + $0x748] ss:$16 sps:$4 sm:$0xff]  }
 0x1fe   : > { %3522 = vmatpush2.bf16.msra.mxu1 %v4893_v42  ;;  %3482 = vmatprep.subr.bf16.mxu0 %v4898_v24  ;;  %v4988_v42 = vld [vmem:[#allocation2 + $0x52c] ss:$16 sps:$4 sm:$0xff]  }
 0x1ff   : > { %3523 = vmatprep.subr.bf16.mxu1 %v4901_v46  ;;  %v4991_v24 = vld [vmem:[#allocation2 + $0x72c] ss:$16 sps:$4 sm:$0xff]   ;;  %v4986_v46 = vld [vmem:[#allocation2 + $0x528] ss:$16 sps:$4 sm:$0xff]  }
 0x201   : > { %3483 = vmatpush2.bf16.msra.mxu0 %v4896_v44  ;;  %v4989_v44 = vld [vmem:[#allocation2 + $0x728] ss:$16 sps:$4 sm:$0xff]  }
 0x202   : > { %3524 = vmatpush2.bf16.msra.mxu1 %v4899_v48  ;;  %3534 = vmatprep.subr.bf16.mxu0 %v4904_v8  ;;  %v4994_v48 = vld [vmem:[#allocation2 + $0x50c] ss:$16 sps:$4 sm:$0xff]  }
 0x203   : > { %3575 = vmatprep.subr.bf16.mxu1 %v4907_v43  ;;  %v4997_v8 = vld [vmem:[#allocation2 + $0x70c] ss:$16 sps:$4 sm:$0xff]   ;;  %v4992_v43 = vld [vmem:[#allocation2 + $0x508] ss:$16 sps:$4 sm:$0xff]  }
 0x204   : > { %3485 = vmatmul.mubr.bf16.vlgmr.msra.gmra.mxu0 %v5777_v57  ;;  %v4917_v57 = vld [vmem:[#allocation2 + $0x6a8] ss:$16 sps:$4 sm:$0xff]  }
 0x205   : > { %3526 = vmatmul.mubr.bf16.vlgmr.msra.gmra.mxu1 %v5779_v55  ;;  %3535 = vmatpush1.bf16.msra.mxu0 %v4902_v52  ;;  %v4925_v55 = vld [vmem:[#allocation2 + $0x68c] ss:$16 sps:$4 sm:$0xff]   ;;  %v4995_v52 = vld [vmem:[#allocation2 + $0x708] ss:$16 sps:$4 sm:$0xff]  }
 0x206   : > { %3566 = vmatprep.mubr.bf16.mxu0 %v5785_v35  ;;  %3576 = vmatpush1.bf16.msra.mxu1 %v4905_v16  ;;  %v4923_v35 = vld [vmem:[#allocation2 + $0x688] ss:$16 sps:$4 sm:$0xff]  }
 0x207   : > { %3607 = vmatprep.mubr.bf16.mxu1 %v5787_v59  ;;  %3536 = vmatprep.subr.bf16.mxu0 %v4910_v45  ;;  %v4926_v59 = vld [vmem:[#allocation2 + $0x468] ss:$16 sps:$4 sm:$0xff]  }
 0x208   : > { %3577 = vmatprep.subr.bf16.mxu1 %v4913_v49  ;;  %v4998_v16 = vld [vmem:[%s6002_s5 + $0x78] sm:$0xff]   ;;  %v5000_v49 = vld [vmem:[%s6002_s5 + $0x70] sm:$0xff]  }
 0x209   : > { %3537 = vmatpush1.bf16.msra.mxu0 %v4908_v29  ;;  %v4999_v45 = vld [vmem:[%s6002_s5 + $0x38] sm:$0xff]  }
 0x20a   : > { %3578 = vmatpush1.bf16.msra.mxu1 %v4911_v10  ;;  %3538 = vmatprep.subr.bf16.mxu0 %v4916_v53  ;;  %v5001_v53 = vld [vmem:[%s6002_s5 + $0x30] sm:$0xff]  }
 0x20b   : > { %3579 = vmatprep.subr.bf16.mxu1 %v4919_v30 }
 0x20d   : > { %3539 = vmatpush1.bf16.msra.mxu0 %v4914_v32 }
 0x20e   : > { %3580 = vmatpush1.bf16.msra.mxu1 %v4917_v57  ;;  %3540 = vmatprep.subr.bf16.mxu0 %v4922_v15  ;;  %v5002_v57 = vld [vmem:[%s6002_s5 + $0x68] sm:$0xff]  }
 0x20f   : > { %3581 = vmatprep.subr.bf16.mxu1 %v4925_v55 }
 0x211   : > { %3541 = vmatpush1.bf16.msra.mxu0 %v4920_v0 }
 0x212   : > { %3582 = vmatpush1.bf16.msra.mxu1 %v4923_v35  ;;  %3542 = vmatprep.subr.bf16.mxu0 %v4928_v58  ;;  %v5004_v35 = vld [vmem:[%s6002_s5 + $0x60] sm:$0xff]   ;;  %v5014_v58 = vld [vmem:[%s6002_s5 + $0xf8] sm:$0xff]  }
 0x213   : > { %3583 = vmatprep.subr.bf16.mxu1 %v4931_v3  ;;  %v5015_v3 = vld [vmem:[%s6002_s5 + $0xb8] sm:$0xff]  }
 0x215   : > { %3543 = vmatpush1.bf16.msra.mxu0 %v4926_v59  ;;  %v5016_v59 = vld [vmem:[%s6002_s5 + $0xf0] sm:$0xff]  }
 0x216   : > { %3584 = vmatpush1.bf16.msra.mxu1 %v4929_v61  ;;  %3544 = vmatprep.subr.bf16.mxu0 %v4934_v56  ;;  %v5005_v61 = vld [vmem:[%s6002_s5 + $0x20] sm:$0xff]   ;;  %v5006_v56 = vld [vmem:[%s6002_s5 + $0x58] sm:$0xff]  }
 0x217   : > { %3585 = vmatprep.subr.bf16.mxu1 %v4937_v40  ;;  %v5017_v40 = vld [vmem:[%s6002_s5 + $0xb0] sm:$0xff]  }
 0x219   : > { %3545 = vmatpush1.bf16.msra.mxu0 %v4932_v62  ;;  %v5018_v62 = vld [vmem:[%s6002_s5 + $0xe8] sm:$0xff]  }
 0x21a   : > { %3586 = vmatpush1.bf16.msra.mxu1 %v4935_v23  ;;  %3546 = vmatprep.subr.bf16.mxu0 %v4940_v1  ;;  %v5007_v23 = vld [vmem:[%s6002_s5 + $0x18] sm:$0xff]   ;;  %v5008_v1 = vld [vmem:[%s6002_s5 + $0x50] sm:$0xff]  }
 0x21b   : > { %3587 = vmatprep.subr.bf16.mxu1 %v4943_v4  ;;  %v5019_v4 = vld [vmem:[%s6002_s5 + $0xa8] sm:$0xff]  }
 0x21d   : > { %3547 = vmatpush1.bf16.msra.mxu0 %v4938_v54  ;;  %v5020_v54 = vld [vmem:[%s6002_s5 + $0xe0] sm:$0xff]  }
 0x21e   : > { %3588 = vmatpush1.bf16.msra.mxu1 %v4941_v2  ;;  %3548 = vmatprep.subr.bf16.mxu0 %v4946_v25  ;;  %v5009_v2 = vld [vmem:[%s6002_s5 + $0x10] sm:$0xff]   ;;  %v5010_v25 = vld [vmem:[%s6002_s5 + $0x48] sm:$0xff]  }
 0x21f   : > { %3589 = vmatprep.subr.bf16.mxu1 %v4949_v11  ;;  %v5021_v11 = vld [vmem:[%s6002_s5 + $0xa0] sm:$0xff]  }
 0x221   : > { %3549 = vmatpush1.bf16.msra.mxu0 %v4944_v21  ;;  %v5022_v21 = vld [vmem:[%s6002_s5 + $0xd8] sm:$0xff]  }
 0x222   : > { %3590 = vmatpush1.bf16.msra.mxu1 %v4947_v28  ;;  %3550 = vmatprep.subr.bf16.mxu0 %v4952_v5  ;;  %v5011_v28 = vld [vmem:[%s6002_s5 + $0x8] sm:$0xff]   ;;  %v5012_v5 = vld [vmem:[%s6002_s5 + $0x40] sm:$0xff]  }
 0x223   : > { %3591 = vmatprep.subr.bf16.mxu1 %v4955_v19  ;;  %v5023_v19 = vld [vmem:[%s6002_s5 + $0x98] sm:$0xff]  }
 0x225   : > { %3551 = vmatpush2.bf16.msra.mxu0 %v4950_v22  ;;  %v5024_v22 = vld [vmem:[%s6002_s5 + $0xd0] sm:$0xff]  }
 0x226   : > { %3592 = vmatpush2.bf16.msra.mxu1 %v4953_v34  ;;  %3552 = vmatprep.subr.bf16.mxu0 %v4958_v20  ;;  %v5013_v34 = vld [vmem:[%s6002_s5] sm:$0xff]   ;;  %v5025_v20 = vld [vmem:[%s6002_s5 + $0x90] sm:$0xff]  }
 0x227   : > { %3593 = vmatprep.subr.bf16.mxu1 %v4961_v26  ;;  %v1986_v26 = vld [vmem:[%s6001_s4] sm:$0xf] }
 0x229   : > { %3553 = vmatpush2.bf16.msra.mxu0 %v4956_v27  ;;  %v6050_v27 = vsub.s32 0, %v5548_v47 }
 0x22a   : > { %3594 = vmatpush2.bf16.msra.mxu1 %v4959_v9  ;;  %3554 = vmatprep.subr.bf16.mxu0 %v4964_v51  ;;  %v6051_v51 = vsub.s32 1, %v5548_v47 }
 0x22b   : > { %3595 = vmatprep.subr.bf16.mxu1 %v4967_v12  ;;  %v1991_v9 = vrot.slane %v1986_v26, %v6050_v27 }
 0x22c   : > { %v1995_v12 = vrot.slane %v1986_v26, %v6051_v51 }
 0x22d   : > { %3555 = vmatpush2.bf16.msra.mxu0 %v4962_v17 }
 0x22e   : > { %3596 = vmatpush2.bf16.msra.mxu1 %v4965_v7  ;;  %3556 = vmatprep.subr.bf16.mxu0 %v4970_v31 }
 0x22f   : > { %3597 = vmatprep.subr.bf16.mxu1 %v4973_v63 }
 0x231   : > { %3557 = vmatpush2.bf16.msra.mxu0 %v4968_v6 }
 0x232   : > { %3598 = vmatpush2.bf16.msra.mxu1 %v4971_v33  ;;  %3558 = vmatprep.subr.bf16.mxu0 %v4976_v36 }
 0x233   : > { %3599 = vmatprep.subr.bf16.mxu1 %v4979_v18 }
 0x235   : > { %3559 = vmatpush2.bf16.msra.mxu0 %v4974_v50 }
 0x236   : > { %3600 = vmatpush2.bf16.msra.mxu1 %v4977_v14  ;;  %3560 = vmatprep.subr.bf16.mxu0 %v4982_v13 }
 0x237   : > { %3601 = vmatprep.subr.bf16.mxu1 %v4985_v60 }
 0x239   : > { %3561 = vmatpush2.bf16.msra.mxu0 %v4980_v38 }
 0x23a   : > { %3602 = vmatpush2.bf16.msra.mxu1 %v4983_v41  ;;  %3562 = vmatprep.subr.bf16.mxu0 %v4988_v42 }
 0x23b   : > { %3603 = vmatprep.subr.bf16.mxu1 %v4991_v24 }
 0x23d   : > { %3563 = vmatpush2.bf16.msra.mxu0 %v4986_v46 }
 0x23e   : > { %3604 = vmatpush2.bf16.msra.mxu1 %v4989_v44  ;;  %3564 = vmatprep.subr.bf16.mxu0 %v4994_v48  ;;  %v5026_v44 = vld [vmem:[%s6002_s5 + $0xc8] sm:$0xff]  }
 0x23f   : > { %3605 = vmatprep.subr.bf16.mxu1 %v4997_v8  ;;  %v5027_v48 = vld [vmem:[%s6002_s5 + $0x88] sm:$0xff]   ;;  %v5028_v8 = vld [vmem:[%s6002_s5 + $0xc0] sm:$0xff]  }
 0x241   : > { %3565 = vmatpush2.bf16.msra.mxu0 %v4992_v43 }
 0x242   : > { %3606 = vmatpush2.bf16.msra.mxu1 %v4995_v52  ;;  %4479 = vmatprep.subr.bf16.mxu0 %v4998_v16  ;;  %v5029_v52 = vld [vmem:[%s6002_s5 + $0x80] sm:$0xff]  }
 0x243   : > { %4501 = vmatprep.subr.bf16.mxu1 %v5014_v58 }
 0x244   : > { %3567 = vmatmul.mubr.bf16.vlgmr.msra.gmra.mxu0 %v5793_v37  ;;  %v5817_v29 = vpop.f32.mrf.mxu0  ;;  %v5819_v10 = vpop.f32.mrf.mxu1 }
 0x245   : > { %3608 = vmatmul.mubr.bf16.vlgmr.msra.gmra.mxu1 %v5797_v39  ;;  %4480 = vmatpush3.bf16.msra.mxu0 %v4999_v45  ;;  %v5003_v39 = vld [vmem:[%s6002_s5 + $0x28] sm:$0xff]   ;;  %v3323_v17 = vadd.f32 %v5817_v29, %v1991_v9 }
 0x246   : > { %v3324_v30 = vpop.f32.mrf.mxu0  ;;  %v5825_v32 = vpop.f32.mrf.mxu1  ;;  %4481 = vmatprep.subr.bf16.mxu0 %v5000_v49  ;;  %4502 = vmatpush3.bf16.msra.mxu1 %v5015_v3 }
 0x247   : > { %4503 = vmatprep.subr.bf16.mxu1 %v5016_v59  ;;  %v3325_v7 = vadd.f32 %v3324_v30, %v1995_v12  ;;  %v3364_v31 = vadd.f32 %v5819_v10, %v3323_v17 }
 0x248   : > { %v3326_v37 = vpop.f32.mrf.mxu0  ;;  %v3367_v15 = vpop.f32.mrf.mxu1 }
 0x249   : > { %4482 = vmatpush3.bf16.msra.mxu0 %v5001_v53  ;;  %v3366_v33 = vadd.f32 %v5825_v32, %v3325_v7  ;;  %v6053_v15 = vsub.s32 3, %v5548_v47 }
 0x24a   : > { %v3327_v55 = vpop.f32.mrf.mxu0  ;;  %v3368_v0 = vpop.f32.mrf.mxu1  ;;  %4483 = vmatprep.subr.bf16.mxu0 %v5002_v57  ;;  %4504 = vmatpush3.bf16.msra.mxu1 %v5017_v40  ;;  %v6052_v57 = vsub.s32 2, %v5548_v47 }
 0x24b   : > { %4505 = vmatprep.subr.bf16.mxu1 %v5018_v62 }
 0x24c   : > { %v1999_v37 = vrot.slane %v1986_v26, %v6052_v57 }
 0x24d   : > { %4484 = vmatpush3.bf16.msra.mxu0 %v5003_v39  ;;  %v2003_v39 = vrot.slane %v1986_v26, %v6053_v15 }
 0x24e   : > { %4485 = vmatprep.subr.bf16.mxu0 %v5004_v35  ;;  %4506 = vmatpush3.bf16.msra.mxu1 %v5019_v4 }
 0x24f   : > { %4507 = vmatprep.subr.bf16.mxu1 %v5020_v54 }
 0x251   : > { %4486 = vmatpush3.bf16.msra.mxu0 %v5005_v61 }
 0x252   : > { %4487 = vmatprep.subr.bf16.mxu0 %v5006_v56  ;;  %4508 = vmatpush3.bf16.msra.mxu1 %v5021_v11 }
 0x253   : > { %4509 = vmatprep.subr.bf16.mxu1 %v5022_v21 }
 0x255   : > { %4488 = vmatpush3.bf16.msra.mxu0 %v5007_v23 }
 0x256   : > { %4489 = vmatprep.subr.bf16.mxu0 %v5008_v1  ;;  %4510 = vmatpush3.bf16.msra.mxu1 %v5023_v19 }
 0x257   : > { %4511 = vmatprep.subr.bf16.mxu1 %v5024_v22 }
 0x259   : > { %4490 = vmatpush3.bf16.msra.mxu0 %v5009_v2 }
 0x25a   : > { %4491 = vmatprep.subr.bf16.mxu0 %v5010_v25  ;;  %4512 = vmatpush3.bf16.msra.mxu1 %v5025_v20 }
 0x25b   : > { %4513 = vmatprep.subr.bf16.mxu1 %v5026_v44 }
 0x25d   : > { %4492 = vmatpush3.bf16.msra.mxu0 %v5011_v28 }
 0x25e   : > { %4493 = vmatprep.subr.bf16.mxu0 %v5012_v5  ;;  %4514 = vmatpush3.bf16.msra.mxu1 %v5027_v48 }
 0x25f   : > { %4515 = vmatprep.subr.bf16.mxu1 %v5028_v8 }
 0x261   : > { %4494 = vmatpush3.bf16.msra.mxu0 %v5013_v34 }
 0x262   : > { %4516 = vmatpush3.bf16.msra.mxu1 %v5029_v52 }
 0x284   : > { %v3404_v63 = vpop.f32.mrf.mxu0  ;;  %v3445_v6 = vpop.f32.mrf.mxu1 }
 0x285   : > { %v3405_v36 = vadd.f32 %v3404_v63, %v3364_v31 }
 0x286   : > { %v3406_v18 = vpop.f32.mrf.mxu0  ;;  %v3447_v50 = vpop.f32.mrf.mxu1 }
 0x287   : > { %v3446_v14 = vadd.f32 %v3445_v6, %v3405_v36  ;;  %v3407_v13 = vadd.f32 %v3406_v18, %v3366_v33 }
 0x288   : > { %v3408_v60 = vpop.f32.mrf.mxu0  ;;  %v3449_v38 = vpop.f32.mrf.mxu1 }
 0x289   : > { %3616 = vst [vmem:[%s5913_s25] sm:$0xff] %v3446_v14  ;;  %v3448_v41 = vadd.f32 %v3447_v50, %v3407_v13  ;;  %v3620_v43 = vpack.c.bf16 %v3446_v14, %v3446_v14 }
 0x28a   : > { %v3409_v42 = vpop.f32.mrf.mxu0  ;;  %v3450_v24 = vpop.f32.mrf.mxu1 }
 0x28b   : > { %3617 = vst [vmem:[%s5913_s25 + $0x8] sm:$0xff] %v3448_v41  ;;  %v3621_v46 = vpack.c.bf16 %v3448_v41, %v3448_v41 }
 0x28d   : > { %3919 = vmatprep.mubr.bf16.mxu0 %v3621_v46 }
 0x28e   : > { %3920 = vmatmul.mubr.bf16.vlgmr.msra.gmra.mxu0 %v3620_v43 }
 0x2c4   : > { %v3486_v16 = vpop.f32.mrf.mxu0 }
 0x2c5   : > { %v3527_v45 = vpop.f32.mrf.mxu1  ;;  %v3487_v55 = vadd.f32 %v3486_v16, %v1999_v37 }
 0x2c6   : > { %v3488_v49 = vpop.f32.mrf.mxu0 }
 0x2c7   : > { %v3529_v29 = vpop.f32.mrf.mxu1  ;;  %v3489_v0 = vadd.f32 %v3488_v49, %v2003_v39  ;;  %v3528_v35 = vadd.f32 %v3527_v45, %v3487_v55 }
 0x2c8   : > { %v3490_v10 = vpop.f32.mrf.mxu0 }
 0x2c9   : > { %v3531_v53 = vpop.f32.mrf.mxu1  ;;  %v3530_v3 = vadd.f32 %v3529_v29, %v3489_v0 }
 0x2ca   : > { %v3491_v30 = vpop.f32.mrf.mxu0 }
 0x2cb   : > { %v3532_v32 = vpop.f32.mrf.mxu1 }
 0x304   : > { %v3568_v58 = vpop.f32.mrf.mxu0 }
 0x305   : > { %v3569_v59 = vadd.f32 %v3568_v58, %v3528_v35  ;;  %v3609_v61 = vpop.f32.mrf.mxu1 }
 0x306   : > { %v3570_v56 = vpop.f32.mrf.mxu0 }
 0x307   : > { %v3610_v40 = vadd.f32 %v3609_v61, %v3569_v59  ;;  %v3571_v62 = vadd.f32 %v3570_v56, %v3530_v3  ;;  %v3611_v23 = vpop.f32.mrf.mxu1 }
 0x308   : > { %v3572_v1 = vpop.f32.mrf.mxu0 }
 0x309   : > { %3618 = vst [vmem:[%s5913_s25 + $0x10] sm:$0xff] %v3610_v40  ;;  %v3612_v4 = vadd.f32 %v3611_v23, %v3571_v62  ;;  %v3613_v54 = vpop.f32.mrf.mxu1  ;;  %v3622_v11 = vpack.c.bf16 %v3610_v40, %v3610_v40 }
 0x30a   : > { %v3573_v47 = vpop.f32.mrf.mxu0 }
 0x30b   : > { %3619 = vst [vmem:[%s5913_s25 + $0x18] sm:$0xff] %v3612_v4  ;;  %v3623_v2 = vpack.c.bf16 %v3612_v4, %v3612_v4  ;;  %v3614_v25 = vpop.f32.mrf.mxu1 }
 0x30d   : > { %3959 = vmatprep.mubr.bf16.mxu1 %v3623_v2 }
 0x30e   : > { %3960 = vmatmul.mubr.bf16.vlgmr.msra.gmra.mxu1 %v3622_v11 }
 0x34e   : > { %v4495_v21 = vpop.f32.mrf.mxu0 }
 0x350   : > { %v4496_v28 = vpop.f32.mrf.mxu0 }
 0x351   : > { %v4497_v5 = vadd.f32 %v4496_v28, %v4495_v21 }
 0x352   : > { %v4498_v19 = vpop.f32.mrf.mxu0 }
 0x354   : > { %v4499_v22 = vpop.f32.mrf.mxu0 }
 0x355   : > { %5069 = shalt.err (!%p5066_p0)
}
 0x356   : > { %s5070_s20 = scalar_lea.hbm %s3999_s26, 512  ;;  %s5074_s22 = scalar_lea.hbm %s6005_s8, 1024 }
 0x357   : > { %p5071_p1 = scmp.ne.s32.totalorder %s3999_s26, %s5070_s20  ;;  %p5075_p4 = scmp.lt.s32.totalorder %s3999_s26, %s6005_s8 }
 0x358   : > { %p5076_p7 = scmp.lt.s32.totalorder %s5074_s22, %s5070_s20 }
 0x359   : > { %p5072_p2 = pnand %p5071_p1, %p5244_p5 }
 0x35a   : > { %p5077_p6 = por %p5076_p7, %p5075_p4 }
 0x35b   : > { %p5073_p3 = pneg %p5072_p2 }
 0x35d   : > { %p5078_p8 = pnand %p5077_p6, %p5073_p3 }
 0x35f   : > { %5081 = shalt.err (!%p5078_p8)
}
 0x360   : > { %4528 = dma.vmem_to_hbm [thread:$0]  (%p5244_p5), %s4002_s10, 512, %s3999_s26, %s3974_s12   ;;  %v4437_v34 = vld [vmem:[%s6003_s6] ss:$0 sm:$0xff] }
 0x361   : > { %s4110_s13 = sshll.u32 %s5908_s23, 3  ;;  %s4472_s0 = sshll.u32 %s5227_s9, 7  ;;  %v3922_v27 = vadd.f32 %v4497_v5, %v4437_v34 }
 0x362   : > { %s320_s19 = scalar_lea.vmem [#allocation5], %s4110_s13  ;;  %s5961_s26 = scalar_lea.hbm %s6004_s7, %s4472_s0 }
 0x363   : > { %s3987_s20 = sshll.u32 %s320_s19, 4  ;;  %s3969_s10 = scalar_lea.sflag [#allocation4], %s5908_s23  ;;  %s3988_s20 = int_to_ptr.vmem [resolvable:$true] %s3987_s20 }
 0x364   : > { %s5082_s12 = scalar_lea.vmem %s3988_s20, 128  ;;  %s5160_s9 = smov [#allocation5]  }
 0x365   : > { %p5083_p9 = scmp.ne.s32.totalorder %s3988_s20, %s5082_s12  ;;  %s5086_s22 = sshll.u32 %s5160_s9, 4  ;;  %s5087_s22 = int_to_ptr.vmem [resolvable:$false] %s5086_s22 }
 0x366   : > { %s5088_s24 = scalar_lea.vmem %s5087_s22, 256  ;;  %p5089_p12 = scmp.lt.s32.totalorder %s3988_s20, %s5087_s22 }
 0x367   : > { %p5084_p10 = pnand %p5083_p9, %p5244_p5  ;;  %p5090_p13 = scmp.lt.s32.totalorder %s5088_s24, %s5082_s12 }
 0x369   : > { %p5085_p11 = pneg %p5084_p10  ;;  %p5091_p0 = por %p5090_p13, %p5089_p12 }
 0x36b   : > { %p5092_p1 = pnand %p5091_p0, %p5085_p11 }
 0x3ce   : > { %v4517_v20 = vpop.f32.mrf.mxu1 }
 0x3d0   : > { %v4518_v26 = vpop.f32.mrf.mxu1 }
 0x3d1   : > { %v4519_v9 = vadd.f32 %v4518_v26, %v4517_v20 }
 0x3d2   : > { %v4520_v51 = vpop.f32.mrf.mxu1 }
 0x3d3   : > { %v3962_v12 = vadd.f32 %v4519_v9, %v3922_v27 }
 0x3d4   : > { %v4521_v17 = vpop.f32.mrf.mxu1 }
 0x3d5   : > { %3967 = vst [vmem:[%s320_s19] sm:$0xff] %v3962_v12 }
 0x3d6   : > { %5095 = shalt.err (!%p5092_p1)
}
 0x3d7   : > { %s5096_s13 = scalar_lea.hbm %s5961_s26, 128  ;;  %s5100_s18 = scalar_lea.hbm %s6004_s7, 256 }
 0x3d8   : > { %p5097_p2 = scmp.ne.s32.totalorder %s5961_s26, %s5096_s13  ;;  %p5101_p7 = scmp.lt.s32.totalorder %s5961_s26, %s6004_s7 }
 0x3d9   : > { %p5102_p6 = scmp.lt.s32.totalorder %s5100_s18, %s5096_s13 }
 0x3da   : > { %p5098_p3 = pnand %p5097_p2, %p5244_p5 }
 0x3db   : > { %p5103_p8 = por %p5102_p6, %p5101_p7 }
 0x3dc   : > { %p5099_p4 = pneg %p5098_p3 }
 0x3de   : > { %p5104_p9 = pnand %p5103_p8, %p5099_p4 }
 0x3e0   : > { %5107 = shalt.err (!%p5104_p9)
}
 0x3e1   : > { %4527 = dma.vmem_to_hbm [thread:$0]  (%p5244_p5), %s3988_s20, 128, %s5961_s26, %s3969_s10  }
 0x3e2 PF: > { %p4544_p10 = scmp.ge.s32.totalorder %s5150_s30, 2  ;;  %s4013_s25 = sand.u32 1, %s5138_s27  }
 0x3e3   : > { %p6054_p11 = scmp.ne.s32.totalorder %s6013_s16, 0  ;;  %s4014_s21 = scalar_lea.sflag [#allocation4], %s4013_s25 }
 0x3e5   : > { %p4536_p12 = pnand %p4544_p10, %p6054_p11 }
 0x3e7   : > { %p4537_p13 = pneg %p4536_p12 }
 0x3e9   : > { %5129 = dma.done.wait (%p4537_p13), %s4014_s21, 128  }
 0x3ea   : > { %5131 = vsyncadd (%p4537_p13), %s4014_s21, 4294967168  ;;  %s4023_s12 = scalar_lea.sflag [#allocation7], %s4013_s25 }
 0x3eb   : > { %5133 = dma.done.wait (%p4537_p13), %s4023_s12, 512  }
 0x3ec   : > { %5135 = vsyncadd (%p4537_p13), %s4023_s12, 4294966784  ;;  %p23_p5 = scmp.ge.s32.totalorder %s5231_s11, 4   ;;  %s6055_s27 = smov %s5142_s28 }
 0x3ed   : > { %s6056_s28 = smov %s5146_s29  ;;  %s6057_s29 = smov %s5242_s14 }
 0x3ee   : > { %s6058_s30 = smov %s5231_s11  ;;  %25 = sbr.rel (!%p23_p5) target bundleno = 8 (0x8), region = 107 }
 0x3f3   :  { %4028 = vsyncpa [#allocation3], 1 }
 0x3f4   :  { %4030 = vsyncpa [#allocation3 + $0x1], 1 }
 0x3f5   :  { %4031 = vsyncpa [#allocation4], 1 }
 0x3f6   :  { %4033 = vsyncpa [#allocation4 + $0x1], 1 }
 0x3f7   :  { %4034 = vsyncpa [#allocation7], 1 }
 0x3f8   :  { %4036 = vsyncpa [#allocation7 + $0x1], 1 }

</bundles_post_ra>
